<compile_context>
chip_gen: v6e
topology: v6e:2x2x1
jax: 0.10.0
libtpu: 0.0.40
codegen_flags: <defaults>
</compile_context>

<pallas_src>
import math
import functools

import numpy as np
import jax
import jax.numpy as jnp
from jax.experimental import pallas as pl
from jax.experimental.pallas import tpu as pltpu

WINDOW_SIZE = 11
SIGMA = 1.5
C1 = 0.01 ** 2
C2 = 0.03 ** 2


def _gaussian_1d(window_size: int = WINDOW_SIZE, sigma: float = SIGMA):
    # Same as SSIM._gaussian: normalized 1D Gaussian, deterministic.
    g = [math.exp(-((x - window_size // 2) ** 2) / float(2 * sigma ** 2))
         for x in range(window_size)]
    s = sum(g)
    return tuple(v / s for v in g)


def _blur_matrix_np(n: int, weights) -> np.ndarray:
    """Banded Toeplitz matrix B with B[i, j] = w[j - i + pad] inside the band.

    (B @ X)[i, :] = sum_k w[k] * X[i + k - pad, :] with zero padding, i.e. a
    1D Gaussian blur along the leading axis.  The window is symmetric, so the
    same matrix applied on the right (X @ B) blurs along the trailing axis.
    """
    pad = len(weights) // 2
    m = np.zeros((n, n), dtype=np.float32)
    for k, wk in enumerate(weights):
        idx = np.arange(max(0, pad - k), min(n, n + pad - k))
        m[idx, idx + k - pad] = wk
    return m


def _ssim_kernel(bhd_ref, bw_ref, img1_ref, img2_ref, out_ref):
    # img refs are (C*H, W) slabs for one image; blur matrices are resident.
    x1 = img1_ref[...].astype(jnp.float32)
    x2 = img2_ref[...].astype(jnp.float32)
    ch = x1.shape[0]                       # C*H rows per field

    # Stack the 5 fields along sublanes (cheap tile-row concatenation).
    fields = jnp.concatenate(
        [x1, x2, x1 * x1, x2 * x2, x1 * x2], axis=0)        # (5*C*H, W)

    # Separable Gaussian conv for all fields/channels = two MXU matmuls.
    t = jnp.dot(bhd_ref[...], fields,                         # row (H) blur
                preferred_element_type=jnp.float32)
    y = jnp.dot(t, bw_ref[...],                                # col (W) blur
                preferred_element_type=jnp.float32)            # (5*C*H, W)

    mu1 = y[0 * ch:1 * ch]
    mu2 = y[1 * ch:2 * ch]
    e11 = y[2 * ch:3 * ch]
    e22 = y[3 * ch:4 * ch]
    e12 = y[4 * ch:5 * ch]

    mu1_sq = mu1 * mu1
    mu2_sq = mu2 * mu2
    mu1_mu2 = mu1 * mu2
    sigma1_sq = e11 - mu1_sq
    sigma2_sq = e22 - mu2_sq
    sigma12 = e12 - mu1_mu2

    num = (2.0 * mu1_mu2 + C1) * (2.0 * sigma12 + C2)
    den = (mu1_sq + mu2_sq + C1) * (sigma1_sq + sigma2_sq + C2)
    # Exact reciprocal (approx=True's ~1e-3 rel error is too loose here).
    ssim_map = num * pl.reciprocal(den, approx=False)

    # Per-image partial sum; final mean is done in JAX.
    out_ref[...] = jnp.sum(ssim_map, keepdims=True)            # (1, 1)


@functools.partial(jax.jit, static_argnames=("window_size",))
def ssim_pallas(img1, img2, window_size=WINDOW_SIZE):
    """Equivalent of SSIM(window_size=11, size_average=True)(img1, img2)."""
    N, C, H, W = img1.shape
    weights = _gaussian_1d(window_size, SIGMA)
    bh = _blur_matrix_np(H, weights)                            # (H, H)
    bw = jnp.asarray(_blur_matrix_np(W, weights))               # (W, W)
    # Block-diagonal row-blur: applies BH to each of the 5*C (H, W) slabs.
    bhd = jnp.asarray(np.kron(np.eye(5 * C, dtype=np.float32), bh))

    # Collapse (C, H) so each image is a single (C*H, W) slab (free reshape).
    img1f = img1.reshape(N, C * H, W)
    img2f = img2.reshape(N, C * H, W)

    img_spec = pl.BlockSpec((pl.Squeezed(), C * H, W), lambda b: (b, 0, 0))

    partial_sums = pl.pallas_call(
        _ssim_kernel,
        out_shape=jax.ShapeDtypeStruct((N, 1, 1), jnp.float32),
        grid=(N,),
        in_specs=[
            pl.BlockSpec((5 * C * H, 5 * C * H), lambda b: (0, 0)),  # BHD
            pl.BlockSpec((W, W), lambda b: (0, 0)),                  # BW
            img_spec,
            img_spec,
        ],
        out_specs=pl.BlockSpec((pl.Squeezed(), 1, 1), lambda b: (b, 0, 0)),
        compiler_params=pltpu.CompilerParams(
            dimension_semantics=("parallel",)),
    )(bhd, bw, img1f, img2f)

    return jnp.sum(partial_sums) / jnp.float32(N * C * H * W)


def ssim_ref(img1, img2, window_size=WINDOW_SIZE):
    """Pure-JAX reference using an actual grouped 2D conv (matches PyTorch)."""
    g = jnp.asarray(_gaussian_1d(window_size, SIGMA), dtype=jnp.float32)
    w2d = jnp.outer(g, g)
    C = img1.shape[1]
    window = jnp.tile(w2d[None, None], (C, 1, 1, 1))  # (C, 1, ws, ws)
    pad = window_size // 2

    def conv(x):
        return jax.lax.conv_general_dilated(
            x, window, window_strides=(1, 1),
            padding=[(pad, pad), (pad, pad)],
            dimension_numbers=("NCHW", "OIHW", "NCHW"),
            feature_group_count=C,
            precision=jax.lax.Precision.HIGHEST)

    mu1, mu2 = conv(img1), conv(img2)
    mu1_sq, mu2_sq, mu1_mu2 = mu1 * mu1, mu2 * mu2, mu1 * mu2
    sigma1_sq = conv(img1 * img1) - mu1_sq
    sigma2_sq = conv(img2 * img2) - mu2_sq
    sigma12 = conv(img1 * img2) - mu1_mu2
    ssim_map = ((2 * mu1_mu2 + C1) * (2 * sigma12 + C2)) / (
        (mu1_sq + mu2_sq + C1) * (sigma1_sq + sigma2_sq + C2))
    return jnp.mean(ssim_map)


if __name__ == "__main__":
    key = jax.random.PRNGKey(0)
    k1, k2 = jax.random.split(key)
    N, C, H, W = 2, 4, 16, 16
    img1 = jax.random.uniform(k1, (N, C, H, W), dtype=jnp.float32)
    img2 = jax.random.uniform(k2, (N, C, H, W), dtype=jnp.float32)

    out = ssim_pallas(img1, img2)
    jax.block_until_ready(out)

    ref = ssim_ref(img1, img2)
    assert jnp.allclose(out, ref, atol=1e-4, rtol=1e-4), (float(out), float(ref))
    print("KERNEL_OK")
</pallas_src>

<mosaic_0001>
module attributes {stable_mosaic.version = 11 : i64} {
  func.func @_ssim_kernel(%arg0: i32, %arg1: memref<320x320xf32, #tpu.memory_space<vmem>>, %arg2: memref<16x16xf32, #tpu.memory_space<vmem>>, %arg3: memref<1x64x16xf32, #tpu.memory_space<vmem>>, %arg4: memref<1x64x16xf32, #tpu.memory_space<vmem>>, %arg5: memref<1x1x1xf32, #tpu.memory_space<vmem>>) attributes {dimension_semantics = [#tpu.dimension_semantics<parallel>], iteration_bounds = array<i64: 2>, scalar_prefetch = 0 : i64, scratch_operands = 0 : i64, tpu.core_type = #tpu.core_type<tc>, window_params = [{pipeline_mode = #tpu.pipeline_mode<synchronous>, transform_indices = @transform_0, window_bounds = array<i64: 320, 320>}, {pipeline_mode = #tpu.pipeline_mode<synchronous>, transform_indices = @transform_1, window_bounds = array<i64: 16, 16>}, {transform_indices = @transform_2, window_bounds = array<i64: 1, 64, 16>}, {transform_indices = @transform_3, window_bounds = array<i64: 1, 64, 16>}, {transform_indices = @transform_4, window_bounds = array<i64: 1, 1, 1>}]} {
    %c0 = arith.constant 0 : index
    %c0_0 = arith.constant 0 : index
    %c0_1 = arith.constant 0 : index
    %0 = vector.load %arg3[%c0, %c0_0, %c0_1] : memref<1x64x16xf32, #tpu.memory_space<vmem>>, vector<1x64x16xf32>
    %1 = vector.shape_cast %0 : vector<1x64x16xf32> to vector<64x16xf32>
    %c0_2 = arith.constant 0 : index
    %c0_3 = arith.constant 0 : index
    %c0_4 = arith.constant 0 : index
    %2 = vector.load %arg4[%c0_2, %c0_3, %c0_4] : memref<1x64x16xf32, #tpu.memory_space<vmem>>, vector<1x64x16xf32>
    %3 = vector.shape_cast %2 : vector<1x64x16xf32> to vector<64x16xf32>
    %4 = arith.mulf %1, %1 : vector<64x16xf32>
    %5 = arith.mulf %3, %3 : vector<64x16xf32>
    %6 = arith.mulf %1, %3 : vector<64x16xf32>
    %7 = tpu.concatenate %1, %3, %4, %5, %6 in 0 : vector<64x16xf32>, vector<64x16xf32>, vector<64x16xf32>, vector<64x16xf32>, vector<64x16xf32> -> vector<320x16xf32>
    %c0_5 = arith.constant 0 : index
    %c0_6 = arith.constant 0 : index
    %8 = vector.load %arg1[%c0_5, %c0_6] : memref<320x320xf32, #tpu.memory_space<vmem>>, vector<320x320xf32>
    %cst = arith.constant dense<0.000000e+00> : vector<320x16xf32>
    %9 = tpu.matmul %8, %7, %cst {dimension_numbers = #tpu.dot_dimension_numbers<[1], [0], [0], [1], [0, 0, 1, 1], [], []>} : vector<320x320xf32>, vector<320x16xf32>, vector<320x16xf32> -> vector<320x16xf32>
    %c0_7 = arith.constant 0 : index
    %c0_8 = arith.constant 0 : index
    %10 = vector.load %arg2[%c0_7, %c0_8] : memref<16x16xf32, #tpu.memory_space<vmem>>, vector<16x16xf32>
    %cst_9 = arith.constant dense<0.000000e+00> : vector<320x16xf32>
    %11 = tpu.matmul %9, %10, %cst_9 {dimension_numbers = #tpu.dot_dimension_numbers<[1], [0], [0], [1], [0, 0, 1, 1], [], []>} : vector<320x16xf32>, vector<16x16xf32>, vector<320x16xf32> -> vector<320x16xf32>
    %12 = vector.extract_strided_slice %11 {offsets = [0, 0], sizes = [64, 16], strides = [1, 1]} : vector<320x16xf32> to vector<64x16xf32>
    %13 = vector.extract_strided_slice %11 {offsets = [64, 0], sizes = [64, 16], strides = [1, 1]} : vector<320x16xf32> to vector<64x16xf32>
    %14 = vector.extract_strided_slice %11 {offsets = [128, 0], sizes = [64, 16], strides = [1, 1]} : vector<320x16xf32> to vector<64x16xf32>
    %15 = vector.extract_strided_slice %11 {offsets = [192, 0], sizes = [64, 16], strides = [1, 1]} : vector<320x16xf32> to vector<64x16xf32>
    %16 = vector.extract_strided_slice %11 {offsets = [256, 0], sizes = [64, 16], strides = [1, 1]} : vector<320x16xf32> to vector<64x16xf32>
    %17 = arith.mulf %12, %12 : vector<64x16xf32>
    %18 = arith.mulf %13, %13 : vector<64x16xf32>
    %19 = arith.mulf %12, %13 : vector<64x16xf32>
    %20 = arith.subf %14, %17 : vector<64x16xf32>
    %21 = arith.subf %15, %18 : vector<64x16xf32>
    %22 = arith.subf %16, %19 : vector<64x16xf32>
    %cst_10 = arith.constant 2.000000e+00 : f32
    %23 = vector.broadcast %cst_10 : f32 to vector<64x16xf32>
    %24 = arith.mulf %23, %19 : vector<64x16xf32>
    %cst_11 = arith.constant 9.99999974E-5 : f32
    %25 = vector.broadcast %cst_11 : f32 to vector<64x16xf32>
    %26 = arith.addf %24, %25 : vector<64x16xf32>
    %cst_12 = arith.constant 2.000000e+00 : f32
    %27 = vector.broadcast %cst_12 : f32 to vector<64x16xf32>
    %28 = arith.mulf %27, %22 : vector<64x16xf32>
    %cst_13 = arith.constant 8.99999984E-4 : f32
    %29 = vector.broadcast %cst_13 : f32 to vector<64x16xf32>
    %30 = arith.addf %28, %29 : vector<64x16xf32>
    %31 = arith.mulf %26, %30 : vector<64x16xf32>
    %32 = arith.addf %17, %18 : vector<64x16xf32>
    %cst_14 = arith.constant 9.99999974E-5 : f32
    %33 = vector.broadcast %cst_14 : f32 to vector<64x16xf32>
    %34 = arith.addf %32, %33 : vector<64x16xf32>
    %35 = arith.addf %20, %21 : vector<64x16xf32>
    %cst_15 = arith.constant 8.99999984E-4 : f32
    %36 = vector.broadcast %cst_15 : f32 to vector<64x16xf32>
    %37 = arith.addf %35, %36 : vector<64x16xf32>
    %38 = arith.mulf %34, %37 : vector<64x16xf32>
    %39 = tpu.reciprocal %38 : vector<64x16xf32> -> vector<64x16xf32>
    %40 = arith.mulf %31, %39 : vector<64x16xf32>
    %41 = vector.shape_cast %40 : vector<64x16xf32> to vector<1x64x16xf32>
    %cst_16 = arith.constant dense<0.000000e+00> : vector<1xf32>
    %42 = vector.multi_reduction <add>, %41, %cst_16 [1, 2] : vector<1x64x16xf32> to vector<1xf32>
    %43 = vector.shape_cast %42 : vector<1xf32> to vector<1x1x1xf32>
    %44 = vector.extract %43[0, 0, 0] : f32 from vector<1x1x1xf32>
    %45 = vector.broadcast %44 : f32 to vector<1x1xf32>
    %c0_17 = arith.constant 0 : index
    %c0_18 = arith.constant 0 : index
    %c0_19 = arith.constant 0 : index
    %46 = vector.load %arg5[%c0_17, %c0_18, %c0_19] : memref<1x1x1xf32, #tpu.memory_space<vmem>>, vector<1x1x1xf32>
    %47 = vector.shape_cast %46 : vector<1x1x1xf32> to vector<1x1xf32>
    %48 = vector.shape_cast %45 : vector<1x1xf32> to vector<1x1x1xf32>
    tpu.vector_store %arg5[%c0_17, %c0_18, %c0_19], %48 {strides = array<i32>} : memref<1x1x1xf32, #tpu.memory_space<vmem>>, vector<1x1x1xf32>,
    return
  }
  func.func @transform_0(%arg0: i32) -> (i32, i32) {
    %c0_i32 = arith.constant 0 : i32
    %c0_i32_0 = arith.constant 0 : i32
    %c0_i32_1 = arith.constant 0 : i32
    return %c0_i32, %c0_i32_0 : i32, i32
  }
  func.func @transform_1(%arg0: i32) -> (i32, i32) {
    %c0_i32 = arith.constant 0 : i32
    %c0_i32_0 = arith.constant 0 : i32
    %c0_i32_1 = arith.constant 0 : i32
    return %c0_i32, %c0_i32_0 : i32, i32
  }
  func.func @transform_2(%arg0: i32) -> (i32, i32, i32) {
    %c0_i32 = arith.constant 0 : i32
    %c0_i32_0 = arith.constant 0 : i32
    %c0_i32_1 = arith.constant 0 : i32
    return %arg0, %c0_i32, %c0_i32_0 : i32, i32, i32
  }
  func.func @transform_3(%arg0: i32) -> (i32, i32, i32) {
    %c0_i32 = arith.constant 0 : i32
    %c0_i32_0 = arith.constant 0 : i32
    %c0_i32_1 = arith.constant 0 : i32
    return %arg0, %c0_i32, %c0_i32_0 : i32, i32, i32
  }
  func.func @transform_4(%arg0: i32) -> (i32, i32, i32) {
    %c0_i32 = arith.constant 0 : i32
    %c0_i32_0 = arith.constant 0 : i32
    %c0_i32_1 = arith.constant 0 : i32
    return %arg0, %c0_i32, %c0_i32_0 : i32, i32, i32
  }
}

</mosaic_0001>

<bundles_post_ra>
// kernel: ssim_pallas.1
= control target key start
LH: loop header
LB: loop body
LE: loop exit
PB: predicated region body
PF: predicated region fallthrough
CT: control target
= control target key end

     0   :  { %9 = vsyncpa [#allocation3], 0  ;;  %s2858_s0 = inlined_call_operand.hbm [shape: f32[320,320], index: 0, kind: input, shape index: {}]   ;;  %s2859_s1 = inlined_call_operand.hbm [shape: f32[16,16], index: 1, kind: input, shape index: {}]   ;;  %s2860_s2 = inlined_call_operand.hbm [shape: f32[2,64,16], index: 2, kind: input, shape index: {}]   ;;  %s2861_s3 = inlined_call_operand.hbm [shape: f32[2,64,16], index: 3, kind: input, shape index: {}]   ;;  %s2862_s4 = inlined_call_operand.vmem [shape: f32[2,1,1], index: 4, kind: output, shape index: {}]  }
   0x1   :  { %10 = vsyncpa [#allocation5], 0  ;;  %s2350_s15 = smov 0   ;;  %s2352_s16 = smov 0  }
   0x2   :  { %s2354_s17 = smov 0   ;;  %s2356_s18 = smov 0  }
   0x3 LB: > { %s2369_s19 = sadd.s32 4294967295, %s2314_s18   ;;  %s2372_s20 = sadd.s32 1, %s2314_s18   ;;  %s2314_s18 = sphi %s2356_s18, %s2881_s18   ;;  %s2310_s17 = sphi %s2354_s17, %s2880_s17   ;;  %s2306_s16 = sphi %s2352_s16, %s2879_s16   ;;  %s2302_s15 = sphi %s2350_s15, %s2878_s15  }
   0x4   : > { %s62_s21 = ssub.s32 %s2314_s18, %s2372_s20  ;;  %s65_s22 = sadd.s32 1, %s2310_s17 }
   0x5   : > { %p63_p0 = scmp.eq.s32.totalorder %s62_s21, 0  ;;  %p72_p1 = scmp.ne.s32.totalorder %s2310_s17, %s2306_s16 }
   0x6   : > { %p73_p2 = scmp.eq.s32.totalorder %s2314_s18, 0  ;;  %p78_p3 = scmp.ne.s32.totalorder %s2306_s16, %s2302_s15 }
   0x7   : > { %s2382_s23 = scalar_select %p63_p0, %s2310_s17, %s65_s22  }
   0x8   : > { %p74_p4 = por %p73_p2, %p72_p1  ;;  %p2863_p5 = scmp.eq.s32.totalorder %s2369_s19, 0 }
   0x9   : > { %p1747_p6 = scmp.ge.s32.totalorder %s2314_s18, 1  ;;  %p141_p7 = scmp.lt.s32.totalorder %s2314_s18, 3 }
   0xa   : > { %p2389_p8 = por %p2863_p5, %p78_p3  ;;  %s2316_s26 = smov [#allocation2]  }
   0xb   : > { %p2393_p9 = pnand %p1747_p6, %p141_p7  ;;  %s153_s27 = sshll.u32 %s2316_s26, 4  ;;  %s154_s27 = int_to_ptr.vmem [resolvable:$true] %s153_s27 }
   0xc   : > { %s2867_s24 = scalar_select %p2389_p8, 1, 0 }
   0xd   : > { %s2868_s25 = scalar_select %p2393_p9, 1, 0 }
   0xe   : > { %p2090_p10 = pneg %p2393_p9  ;;  %p2106_p12 = scmp.lt.s32.totalorder %s2314_s18, 2 }
   0xf   : > { %s2175_s30 = scalar_lea.vmem %s154_s27, 15360  ;;  %p2183_p6 = scmp.lt.s32.totalorder %s154_s27, %s154_s27 }
  0x10   : > { %p2401_p11 = pnand %p2090_p10, %p2863_p5  ;;  %p2406_p13 = pnand %p2106_p12, %p74_p4 }
  0x11   : > { %p2176_p1 = scmp.ne.s32.totalorder %s154_s27, %s2175_s30  ;;  %p2184_p7 = scmp.lt.s32.totalorder %s2175_s30, %s2175_s30 }
  0x12   : > { %p2864_p0 = pneg %p2401_p11 }
  0x13   : > { %p2185_p10 = por %p2184_p7, %p2183_p6 }
  0x14   : > { %p2178_p2 = pnand %p2176_p1, %p2864_p0 }
  0x16   : > { %p2179_p3 = pneg %p2178_p2 }
  0x18   : > { %p2186_p5 = pnand %p2185_p10, %p2179_p3 }
  0x1a   : > { %2189 = shalt.err (!%p2186_p5)
}
  0x1b   : > { %s2317_s5 = smov 384   ;;  %s2318_s6 = smov 24  }
  0x1c   : > { %2093 = dma.hbm_to_vmem [thread:$0]  (!%p2401_p11), %s2858_s0, 15360, %s154_s27, [#allocation3], %s2317_s5, %s2317_s5, %s2318_s6  }
  0x1d   : > { %s180_s9 = sand.u32 1, %s2314_s18   ;;  %s182_s10 = sand.u32 1, %s2310_s17  }
  0x1e   : > { %s2422_s11 = sshll.u32 %s182_s10, 6  ;;  %s1844_s12 = sshll.u32 %s2314_s18, 10 }
  0x1f   : > { %s2430_s15 = scalar_lea.hbm %s2860_s2, %s1844_s12  ;;  %s184_s21 = scalar_lea.vmem [#allocation6], %s2422_s11 }
  0x20   : > { %s191_s22 = sshll.u32 %s184_s21, 4  ;;  %s2319_s26 = smov [#allocation4]   ;;  %s2433_s22 = int_to_ptr.vmem [resolvable:$true] %s191_s22 }
  0x21   : > { %s2435_s27 = sshll.u32 %s2319_s26, 4  ;;  %s2437_s30 = scalar_lea.sflag [#allocation3], %s180_s9  ;;  %s167_s27 = int_to_ptr.vmem [resolvable:$true] %s2435_s27 }
  0x22   : > { %s2190_s5 = scalar_lea.hbm %s2430_s15, 1024  ;;  %p2192_p5 = pneg %p2406_p13 }
  0x23   : > { %p2191_p4 = scmp.ne.s32.totalorder %s2430_s15, %s2190_s5  ;;  %s2195_s8 = scalar_lea.hbm %s2860_s2, 2048 }
  0x24   : > { %p2196_p2 = scmp.lt.s32.totalorder %s2430_s15, %s2860_s2  ;;  %p2197_p3 = scmp.lt.s32.totalorder %s2195_s8, %s2190_s5 }
  0x25   : > { %p2193_p12 = pnand %p2192_p5, %p2191_p4 }
  0x26   : > { %p2198_p6 = por %p2197_p3, %p2196_p2 }
  0x27   : > { %p2194_p1 = pneg %p2193_p12 }
  0x29   : > { %p2199_p7 = pnand %p2198_p6, %p2194_p1 }
  0x2b   : > { %2202 = shalt.err (!%p2199_p7)
}
  0x2c   : > { %s2203_s9 = scalar_lea.vmem %s2433_s22, 1024  ;;  %s2320_s14 = smov [#allocation6]  }
  0x2d   : > { %p2204_p10 = scmp.ne.s32.totalorder %s2433_s22, %s2203_s9  ;;  %s2208_s21 = sshll.u32 %s2320_s14, 4  ;;  %s2209_s21 = int_to_ptr.vmem [resolvable:$false] %s2208_s21 }
  0x2e   : > { %s2210_s26 = scalar_lea.vmem %s2209_s21, 2048  ;;  %p2211_p0 = scmp.lt.s32.totalorder %s2433_s22, %s2209_s21 }
  0x2f   : > { %p2206_p4 = pnand %p2204_p10, %p2192_p5  ;;  %p2212_p8 = scmp.lt.s32.totalorder %s2210_s26, %s2203_s9 }
  0x31   : > { %p2207_p12 = pneg %p2206_p4  ;;  %p2213_p9 = por %p2212_p8, %p2211_p0 }
  0x33   : > { %p2214_p2 = pnand %p2213_p9, %p2207_p12 }
  0x35   : > { %2217 = shalt.err (!%p2214_p2)
}
  0x36   : > { %s2321_s5 = smov 128   ;;  %s2322_s6 = smov 8  }
  0x37   : > { %2100 = dma.hbm_to_vmem [thread:$0]  (!%p2406_p13), %s2430_s15, 1024, %s2433_s22, %s2437_s30, %s2321_s5, %s2321_s5, %s2322_s6  }
  0x38   : > { %s2229_s7 = scalar_lea.vmem %s167_s27, 256  ;;  %p2871_p8 = pneg %p2401_p11 }
  0x39   : > { %p2230_p1 = scmp.ne.s32.totalorder %s167_s27, %s2229_s7  ;;  %p2237_p3 = scmp.lt.s32.totalorder %s167_s27, %s167_s27 }
  0x3a   : > { %p2238_p6 = scmp.lt.s32.totalorder %s2229_s7, %s2229_s7 }
  0x3b   : > { %p2232_p9 = pnand %p2230_p1, %p2871_p8 }
  0x3c   : > { %p2239_p7 = por %p2238_p6, %p2237_p3 }
  0x3d   : > { %p2233_p0 = pneg %p2232_p9 }
  0x3f   : > { %p2240_p10 = pnand %p2239_p7, %p2233_p0 }
  0x41   : > { %2243 = shalt.err (!%p2240_p10)
}
  0x42   : > { %2096 = dma.hbm_to_vmem [thread:$0]  (!%p2401_p11), %s2859_s1, 256, %s167_s27, [#allocation5], %s2321_s5, %s2321_s5, %s2322_s6  }
  0x43   : > { %s2484_s13 = scalar_lea.hbm %s2861_s3, %s1844_s12  ;;  %s205_s28 = scalar_lea.vmem [#allocation7], %s2422_s11 }
  0x44   : > { %s212_s9 = sshll.u32 %s205_s28, 4  ;;  %s2244_s14 = scalar_lea.hbm %s2484_s13, 1024  ;;  %s213_s9 = int_to_ptr.vmem [resolvable:$true] %s212_s9 }
  0x45   : > { %p2245_p4 = scmp.ne.s32.totalorder %s2484_s13, %s2244_s14  ;;  %s2249_s18 = scalar_lea.hbm %s2861_s3, 2048 }
  0x46   : > { %p2250_p11 = scmp.lt.s32.totalorder %s2484_s13, %s2861_s3  ;;  %p2251_p1 = scmp.lt.s32.totalorder %s2249_s18, %s2244_s14 }
  0x47   : > { %p2247_p12 = pnand %p2245_p4, %p2192_p5 }
  0x48   : > { %p2252_p8 = por %p2251_p1, %p2250_p11 }
  0x49   : > { %p2248_p2 = pneg %p2247_p12 }
  0x4b   : > { %p2253_p9 = pnand %p2252_p8, %p2248_p2 }
  0x4d   : > { %2256 = shalt.err (!%p2253_p9)
}
  0x4e   : > { %s2257_s11 = scalar_lea.vmem %s213_s9, 1024  ;;  %s2323_s12 = smov [#allocation7]  }
  0x4f   : > { %p2258_p0 = scmp.ne.s32.totalorder %s213_s9, %s2257_s11  ;;  %s2262_s8 = sshll.u32 %s2323_s12, 4  ;;  %s2263_s8 = int_to_ptr.vmem [resolvable:$false] %s2262_s8 }
  0x50   : > { %s2264_s10 = scalar_lea.vmem %s2263_s8, 2048  ;;  %p2265_p7 = scmp.lt.s32.totalorder %s213_s9, %s2263_s8 }
  0x51   : > { %p2260_p3 = pnand %p2258_p0, %p2192_p5  ;;  %p2266_p10 = scmp.lt.s32.totalorder %s2264_s10, %s2257_s11 }
  0x53   : > { %p2261_p6 = pneg %p2260_p3  ;;  %p2267_p4 = por %p2266_p10, %p2265_p7 }
  0x55   : > { %p2268_p12 = pnand %p2267_p4, %p2261_p6 }
  0x57   : > { %2271 = shalt.err (!%p2268_p12)
}
  0x58   : > { %2103 = dma.hbm_to_vmem [thread:$0]  (!%p2406_p13), %s2484_s13, 1024, %s213_s9, %s2437_s30, %s2321_s5, %s2321_s5, %s2322_s6  }
  0x59   : > { %p2872_p5 = scmp.ne.s32.totalorder %s2868_s25, 0 }
  0x5a   : > { %p2873_p2 = scmp.eq.s32.totalorder (!%p2872_p5), %s2369_s19, 0 }
  0x5b   : > { %224 = sbr.rel (%p2872_p5) target bundleno = 933 (0x3a5), region = 36 }
  0x60   : > { %2289 = dma.done.wait (%p2873_p2), [#allocation3], 15360   ;;  %p2874_p11 = pmov %p2873_p2 }
  0x61   : > { %p2875_p1 = pmov %p2873_p2 }
  0x62   : > { %2291 = vsyncadd (%p2874_p11), [#allocation3], 4294951936 }
  0x63   : > { %2293 = dma.done.wait (%p2875_p1), [#allocation5], 256   ;;  %p2876_p8 = pmov %p2875_p1 }
  0x64   : > { %s234_s29 = sand.u32 1, %s2369_s19   ;;  %s236_s30 = sand.u32 1, %s2306_s16  }
  0x65   : > { %2295 = vsyncadd (%p2876_p8), [#allocation5], 4294967040  ;;  %s1760_s5 = sshll.u32 %s236_s30, 6  ;;  %s235_s25 = scalar_lea.sflag [#allocation3], %s234_s29 }
  0x66   : > { %s2521_s6 = scalar_lea.vmem [#allocation6], %s1760_s5  ;;  %p2877_p13 = scmp.ne.s32.totalorder %s2867_s24, 0 }
  0x68   : > { %2297 = dma.done.wait (%p2877_p13), %s235_s25, 2048  }
  0x69   : > { %2299 = vsyncadd (%p2877_p13), %s235_s25, 4294965248  ;;  %v2324_v0 = vmov 0.0   ;;  %s2528_s15 = scalar_lea.vmem [#allocation7], %s1760_s5  ;;  %v2542_v4 = vld [vmem:[%s2521_s6 + $0x38] sm:$0xff]  ;;  %v2546_v5 = vld [vmem:[%s2521_s6 + $0x30] sm:$0xff]  ;;  %vm438_vm0 = vcmask 523264  }
  0x6a   : > { %559 = vmatprep.subr.mxu0 %v2324_v0  ;;  %v2531_v1 = vld [vmem:[%s2528_s15 + $0x38] sm:$0xff]  ;;  %v2534_v2 = vld [vmem:[%s2528_s15 + $0x30] sm:$0xff]  ;;  %v2539_v3 = vld [vmem:[%s2528_s15 + $0x28] sm:$0xff]  ;;  %v301_v49 = vmul.f32 %v2542_v4, %v2542_v4  ;;  %v300_v50 = vmul.f32 %v2546_v5, %v2546_v5  ;;  %vm1091_vm1 = vcmask 130048   ;;  %p275_p9 = scmp.lt.s32.totalorder %s2369_s19, 1  ;;  %vm1646_vm2 = vcmask 0  }
  0x6b   : > { %560 = vmatpush1.msra.mxu0 %v2531_v1  ;;  %v317_v6 = vmul.f32 %v2531_v1, %v2542_v4  ;;  %v2552_v7 = vld [vmem:[%s2528_s15 + $0x20] sm:$0xff]  ;;  %v2555_v8 = vld [vmem:[%s2521_s6 + $0x28] sm:$0xff]  ;;  %v316_v9 = vmul.f32 %v2534_v2, %v2546_v5  ;;  %v2564_v11 = vld [vmem:[%s2528_s15 + $0x18] sm:$0xff]  ;;  %v309_v33 = vmul.f32 %v2531_v1, %v2531_v1  ;;  %v308_v34 = vmul.f32 %v2534_v2, %v2534_v2 }
  0x6c   : > { %561 = vmatprep.subr.mxu0 %v2324_v0  ;;  %v315_v10 = vmul.f32 %v2539_v3, %v2555_v8  ;;  %v2567_v12 = vld [vmem:[%s2521_s6 + $0x20] sm:$0xff]  ;;  %v2574_v14 = vld [vmem:[%s2528_s15 + $0x10] sm:$0xff]  ;;  %v2577_v15 = vld [vmem:[%s2521_s6 + $0x18] sm:$0xff]  ;;  %v307_v37 = vmul.f32 %v2539_v3, %v2539_v3  ;;  %v306_v38 = vmul.f32 %v2552_v7, %v2552_v7  ;;  %v305_v41 = vmul.f32 %v2564_v11, %v2564_v11  ;;  %s2883_s19 = smov (!%p275_p9, %s2369_s19), 1 }
  0x6d   : > { %562 = vmatpush1.msra.mxu0 %v2534_v2  ;;  %1936 = vmatprep.subr.mxu1 %v317_v6  ;;  %v314_v13 = vmul.f32 %v2552_v7, %v2567_v12  ;;  %v313_v16 = vmul.f32 %v2564_v11, %v2577_v15  ;;  %v2584_v17 = vld [vmem:[%s2528_s15 + $0x8] sm:$0xff]  ;;  %v2587_v18 = vld [vmem:[%s2521_s6 + $0x10] sm:$0xff]  ;;  %v2594_v20 = vld [vmem:[%s2528_s15] sm:$0xff]  ;;  %v304_v42 = vmul.f32 %v2574_v14, %v2574_v14  ;;  %s277_s13 = scalar_lea.vmem %s2862_s4, %s2883_s19 }
  0x6e   : > { %563 = vmatprep.subr.mxu0 %v2324_v0  ;;  %1937 = vmatpush3.msra.mxu1 %v317_v6  ;;  %v312_v19 = vmul.f32 %v2574_v14, %v2587_v18  ;;  %v2597_v21 = vld [vmem:[%s2521_s6 + $0x8] sm:$0xff]  ;;  %v2604_v23 = vld [vmem:[%s2521_s6] sm:$0xff]  ;;  %v323_v26 = vld [vmem:[#allocation2 + $0x28] sm:$0xff]  ;;  %v303_v45 = vmul.f32 %v2584_v17, %v2584_v17  ;;  %v302_v46 = vmul.f32 %v2594_v20, %v2594_v20 }
  0x6f   : > { %564 = vmatpush1.msra.mxu0 %v2539_v3  ;;  %1938 = vmatprep.subr.mxu1 %v316_v9  ;;  %v311_v22 = vmul.f32 %v2584_v17, %v2597_v21  ;;  %v310_v24 = vmul.f32 %v2594_v20, %v2604_v23  ;;  %v320_v25 = vld [vmem:[#allocation2 + $0x10] sm:$0xff]  ;;  %v319_v27 = vld [vmem:[#allocation2 + $0x8] sm:$0xff]  ;;  %v326_v28 = vld [vmem:[#allocation2 + $0x40] sm:$0xff]  ;;  %v299_v53 = vmul.f32 %v2555_v8, %v2555_v8 }
  0x70   : > { %565 = vmatprep.subr.mxu0 %v2324_v0  ;;  %1939 = vmatpush3.msra.mxu1 %v316_v9  ;;  %v329_v29 = vld [vmem:[#allocation2 + $0x58] sm:$0xff]  ;;  %v332_v30 = vld [vmem:[#allocation2 + $0x70] sm:$0xff]  ;;  %v335_v31 = vld [vmem:[#allocation2 + $0x88] sm:$0xff]  ;;  %v298_v54 = vmul.f32 %v2567_v12, %v2567_v12  ;;  %v297_v57 = vmul.f32 %v2577_v15, %v2577_v15  ;;  %v296_v58 = vmul.f32 %v2587_v18, %v2587_v18 }
  0x71   : > { %566 = vmatpush1.msra.mxu0 %v2552_v7  ;;  %1940 = vmatprep.subr.mxu1 %v315_v10  ;;  %v338_v32 = vld [vmem:[#allocation2 + $0xa0] sm:$0xff]  ;;  %v341_v35 = vld [vmem:[#allocation2 + $0xb8] sm:$0xff]  ;;  %v344_v36 = vld [vmem:[#allocation2 + $0xd0] sm:$0xff]  ;;  %v295_v61 = vmul.f32 %v2597_v21, %v2597_v21  ;;  %v294_v62 = vmul.f32 %v2604_v23, %v2604_v23 }
  0x72   : > { %567 = vmatprep.subr.mxu0 %v2324_v0  ;;  %1941 = vmatpush3.msra.mxu1 %v315_v10  ;;  %v347_v39 = vld [vmem:[#allocation2 + $0xe8] sm:$0xff]  ;;  %v350_v40 = vld [vmem:[#allocation2 + $0x100] sm:$0xff]  ;;  %v353_v43 = vld [vmem:[#allocation2 + $0x118] sm:$0xff] }
  0x73   : > { %568 = vmatpush1.msra.mxu0 %v2564_v11  ;;  %1942 = vmatprep.subr.mxu1 %v314_v13  ;;  %v356_v44 = vld [vmem:[#allocation2 + $0x130] sm:$0xff]  ;;  %v359_v47 = vld [vmem:[#allocation2 + $0x148] sm:$0xff]  ;;  %v362_v48 = vld [vmem:[#allocation2 + $0x160] sm:$0xff] }
  0x74   : > { %569 = vmatprep.subr.mxu0 %v2324_v0  ;;  %1943 = vmatpush3.msra.mxu1 %v314_v13  ;;  %v365_v51 = vld [vmem:[#allocation2 + $0x178] sm:$0xff]  ;;  %v368_v52 = vld [vmem:[#allocation2 + $0x190] sm:$0xff]  ;;  %v371_v55 = vld [vmem:[#allocation2 + $0x1a8] sm:$0xff] }
  0x75   : > { %570 = vmatpush1.msra.mxu0 %v2574_v14  ;;  %1944 = vmatprep.subr.mxu1 %v313_v16  ;;  %v374_v56 = vld [vmem:[#allocation2 + $0x1c0] sm:$0xff]  ;;  %v377_v59 = vld [vmem:[#allocation2 + $0x1d8] sm:$0xff]  ;;  %v380_v60 = vld [vmem:[#allocation2 + $0x1f0] sm:$0xff] }
  0x76   : > { %571 = vmatprep.subr.mxu0 %v2324_v0  ;;  %1945 = vmatpush3.msra.mxu1 %v313_v16  ;;  %v383_v63 = vld [vmem:[#allocation2 + $0x208] sm:$0xff]  ;;  %v386_v1 = vld [vmem:[#allocation2 + $0x220] sm:$0xff]  ;;  %v321_v6 = vld [vmem:[#allocation2 + $0x18] sm:$0xff] }
  0x77   : > { %572 = vmatpush1.msra.mxu0 %v2584_v17  ;;  %1946 = vmatprep.subr.mxu1 %v312_v19  ;;  %v318_v2 = vld [vmem:[#allocation2] sm:$0xff]  ;;  %v325_v7 = vld [vmem:[#allocation2 + $0x38] sm:$0xff]  ;;  %v328_v10 = vld [vmem:[#allocation2 + $0x50] sm:$0xff] }
  0x78   : > { %573 = vmatprep.subr.mxu0 %v2324_v0  ;;  %1947 = vmatpush3.msra.mxu1 %v312_v19  ;;  %v322_v3 = vld [vmem:[#allocation2 + $0x20] sm:$0xff]  ;;  %v401_v11 = vld [vmem:[#allocation2 + $0x298] sm:$0xff]  ;;  %v327_v13 = vld [vmem:[#allocation2 + $0x48] sm:$0xff] }
  0x79   : > { %574 = vmatpush1.msra.mxu0 %v2594_v20  ;;  %1948 = vmatprep.subr.mxu1 %v311_v22  ;;  %v398_v9 = vld [vmem:[#allocation2 + $0x280] sm:$0xff]  ;;  %v331_v14 = vld [vmem:[#allocation2 + $0x68] sm:$0xff]  ;;  %v413_v19 = vld [vmem:[#allocation2 + $0x2f8] sm:$0xff] }
  0x7a   : > { %575 = vmatprep.subr.mxu0 %v2324_v0  ;;  %1949 = vmatpush3.msra.mxu1 %v311_v22  ;;  %v410_v16 = vld [vmem:[#allocation2 + $0x2e0] sm:$0xff]  ;;  %v416_v20 = vld [vmem:[#allocation2 + $0x310] sm:$0xff]  ;;  %v337_v22 = vld [vmem:[#allocation2 + $0x98] sm:$0xff] }
  0x7b   : > { %576 = vmatpush1.msra.mxu0 %v2542_v4  ;;  %1950 = vmatprep.subr.mxu1 %v310_v24  ;;  %v389_v4 = vld [vmem:[#allocation2 + $0x238] sm:$0xff]  ;;  %v330_v17 = vld [vmem:[#allocation2 + $0x60] sm:$0xff] }
  0x7c   : > { %577 = vmatprep.subr.mxu0 %v2324_v0  ;;  %1951 = vmatpush3.msra.mxu1 %v310_v24  ;;  %v422_v24 = vld [vmem:[#allocation2 + $0x340] sm:$0xff] }
  0x7d   : > { %578 = vmatpush1.msra.mxu0 %v2546_v5  ;;  %1952 = vmatprep.mubr.msk.f32.mxu1 %vm438_vm0, %v320_v25  ;;  %v392_v5 = vld [vmem:[#allocation2 + $0x250] sm:$0xff] }
  0x7e   : > { %579 = vmatprep.subr.mxu0 %v2324_v0  ;;  %1953 = vmatmul.mubr.msk.f32.vlgmr.msra.gmra.mxu1 %vm438_vm0, %v323_v26  ;;  %v336_v25 = vld [vmem:[#allocation2 + $0x90] sm:$0xff] }
  0x7f   : > { %580 = vmatpush1.msra.mxu0 %v2555_v8  ;;  %623 = vmatprep.mubr.f32.mxu0 %v319_v27  ;;  %v395_v8 = vld [vmem:[#allocation2 + $0x268] sm:$0xff]  ;;  %v340_v26 = vld [vmem:[#allocation2 + $0xb0] sm:$0xff]  ;;  %v425_v27 = vld [vmem:[#allocation2 + $0x358] sm:$0xff] }
  0x80   : > { %581 = vmatprep.subr.mxu0 %v2324_v0  ;;  %1955 = vmatprep.mubr.msk.f32.mxu1 %vm438_vm0, %v326_v28  ;;  %v428_v28 = vld [vmem:[#allocation2 + $0x370] sm:$0xff] }
  0x81   : > { %582 = vmatpush1.msra.mxu0 %v2567_v12  ;;  %v404_v12 = vld [vmem:[#allocation2 + $0x2b0] sm:$0xff] }
  0x82   : > { %583 = vmatprep.subr.mxu0 %v2324_v0  ;;  %1956 = vmatmul.mubr.msk.f32.gmra.mxu1 %vm438_vm0, %v329_v29  ;;  %v339_v29 = vld [vmem:[#allocation2 + $0xa8] sm:$0xff] }
  0x83   : > { %584 = vmatpush1.msra.mxu0 %v2577_v15  ;;  %1958 = vmatprep.mubr.msk.f32.mxu1 %vm438_vm0, %v332_v30  ;;  %v407_v15 = vld [vmem:[#allocation2 + $0x2c8] sm:$0xff] }
  0x84   : > { %585 = vmatprep.subr.mxu0 %v2324_v0  ;;  %v343_v30 = vld [vmem:[#allocation2 + $0xc8] sm:$0xff] }
  0x85   : > { %586 = vmatpush1.msra.mxu0 %v2587_v18  ;;  %v334_v18 = vld [vmem:[#allocation2 + $0x80] sm:$0xff] }
  0x86   : > { %587 = vmatprep.subr.mxu0 %v2324_v0  ;;  %1959 = vmatmul.mubr.msk.f32.gmra.mxu1 %vm438_vm0, %v335_v31  ;;  %v431_v31 = vld [vmem:[#allocation2 + $0x388] sm:$0xff] }
  0x87   : > { %588 = vmatpush1.msra.mxu0 %v2597_v21  ;;  %1961 = vmatprep.mubr.msk.f32.mxu1 %vm438_vm0, %v338_v32  ;;  %v333_v21 = vld [vmem:[#allocation2 + $0x78] sm:$0xff]  ;;  %v434_v32 = vld [vmem:[#allocation2 + $0x3a0] sm:$0xff] }
  0x88   : > { %589 = vmatprep.subr.mxu0 %v2324_v0 }
  0x89   : > { %590 = vmatpush1.msra.mxu0 %v2604_v23  ;;  %v419_v23 = vld [vmem:[#allocation2 + $0x328] sm:$0xff] }
  0x8a   : > { %591 = vmatprep.subr.mxu0 %v2324_v0  ;;  %1962 = vmatmul.mubr.msk.f32.gmra.mxu1 %vm438_vm0, %v341_v35  ;;  %v437_v35 = vld [vmem:[#allocation2 + $0x3b8] sm:$0xff] }
  0x8b   : > { %592 = vmatpush2.msra.mxu0 %v309_v33  ;;  %1964 = vmatprep.mubr.msk.f32.mxu1 %vm438_vm0, %v344_v36  ;;  %v342_v33 = vld [vmem:[#allocation2 + $0xc0] sm:$0xff]  ;;  %v345_v36 = vld [vmem:[#allocation2 + $0xd8] sm:$0xff] }
  0x8c   : > { %593 = vmatprep.subr.mxu0 %v2324_v0 }
  0x8d   : > { %594 = vmatpush2.msra.mxu0 %v308_v34  ;;  %v346_v34 = vld [vmem:[#allocation2 + $0xe0] sm:$0xff] }
  0x8e   : > { %595 = vmatprep.subr.mxu0 %v2324_v0  ;;  %1965 = vmatmul.mubr.msk.f32.gmra.mxu1 %vm438_vm0, %v347_v39  ;;  %v352_v39 = vld [vmem:[#allocation2 + $0x110] sm:$0xff] }
  0x8f   : > { %596 = vmatpush2.msra.mxu0 %v307_v37  ;;  %1967 = vmatprep.mubr.msk.f32.mxu1 %vm438_vm0, %v350_v40  ;;  %v349_v37 = vld [vmem:[#allocation2 + $0xf8] sm:$0xff]  ;;  %v351_v40 = vld [vmem:[#allocation2 + $0x108] sm:$0xff] }
  0x90   : > { %597 = vmatprep.subr.mxu0 %v2324_v0 }
  0x91   : > { %598 = vmatpush2.msra.mxu0 %v306_v38  ;;  %v348_v38 = vld [vmem:[#allocation2 + $0xf0] sm:$0xff] }
  0x92   : > { %599 = vmatprep.subr.mxu0 %v2324_v0  ;;  %1968 = vmatmul.mubr.msk.f32.gmra.mxu1 %vm438_vm0, %v353_v43  ;;  %v358_v43 = vld [vmem:[#allocation2 + $0x140] sm:$0xff] }
  0x93   : > { %600 = vmatpush2.msra.mxu0 %v305_v41  ;;  %1970 = vmatprep.mubr.msk.f32.mxu1 %vm438_vm0, %v356_v44  ;;  %v355_v41 = vld [vmem:[#allocation2 + $0x128] sm:$0xff]  ;;  %v357_v44 = vld [vmem:[#allocation2 + $0x138] sm:$0xff] }
  0x94   : > { %601 = vmatprep.subr.mxu0 %v2324_v0 }
  0x95   : > { %602 = vmatpush2.msra.mxu0 %v304_v42  ;;  %v354_v42 = vld [vmem:[#allocation2 + $0x120] sm:$0xff] }
  0x96   : > { %603 = vmatprep.subr.mxu0 %v2324_v0  ;;  %1971 = vmatmul.mubr.msk.f32.gmra.mxu1 %vm438_vm0, %v359_v47  ;;  %v364_v47 = vld [vmem:[#allocation2 + $0x170] sm:$0xff] }
  0x97   : > { %604 = vmatpush2.msra.mxu0 %v303_v45  ;;  %1973 = vmatprep.mubr.msk.f32.mxu1 %vm438_vm0, %v362_v48  ;;  %v361_v45 = vld [vmem:[#allocation2 + $0x158] sm:$0xff]  ;;  %v363_v48 = vld [vmem:[#allocation2 + $0x168] sm:$0xff] }
  0x98   : > { %605 = vmatprep.subr.mxu0 %v2324_v0 }
  0x99   : > { %606 = vmatpush2.msra.mxu0 %v302_v46  ;;  %v360_v46 = vld [vmem:[#allocation2 + $0x150] sm:$0xff] }
  0x9a   : > { %607 = vmatprep.subr.mxu0 %v2324_v0  ;;  %1974 = vmatmul.mubr.msk.f32.gmra.mxu1 %vm438_vm0, %v365_v51  ;;  %v370_v51 = vld [vmem:[#allocation2 + $0x1a0] sm:$0xff] }
  0x9b   : > { %608 = vmatpush2.msra.mxu0 %v301_v49  ;;  %1976 = vmatprep.mubr.msk.f32.mxu1 %vm438_vm0, %v368_v52  ;;  %v367_v49 = vld [vmem:[#allocation2 + $0x188] sm:$0xff]  ;;  %v369_v52 = vld [vmem:[#allocation2 + $0x198] sm:$0xff] }
  0x9c   : > { %609 = vmatprep.subr.mxu0 %v2324_v0 }
  0x9d   : > { %610 = vmatpush2.msra.mxu0 %v300_v50  ;;  %v366_v50 = vld [vmem:[#allocation2 + $0x180] sm:$0xff] }
  0x9e   : > { %611 = vmatprep.subr.mxu0 %v2324_v0  ;;  %1977 = vmatmul.mubr.msk.f32.gmra.mxu1 %vm438_vm0, %v371_v55  ;;  %v1089_v55 = vld [vmem:[#allocation4] sm:$0xff] }
  0x9f   : > { %612 = vmatpush2.msra.mxu0 %v299_v53  ;;  %1979 = vmatprep.mubr.msk.f32.mxu1 %vm438_vm0, %v374_v56  ;;  %v373_v53 = vld [vmem:[#allocation2 + $0x1b8] sm:$0xff]  ;;  %v372_v56 = vld [vmem:[#allocation2 + $0x1b0] sm:$0xff] }
  0xa0   : > { %613 = vmatprep.subr.mxu0 %v2324_v0 }
  0xa1   : > { %614 = vmatpush2.msra.mxu0 %v298_v54  ;;  %v1090_v54 = vld [vmem:[#allocation4 + $0x8] sm:$0xff] }
  0xa2   : > { %615 = vmatprep.subr.mxu0 %v2324_v0  ;;  %1980 = vmatmul.mubr.msk.f32.gmra.mxu1 %vm438_vm0, %v377_v59  ;;  %v379_v59 = vld [vmem:[#allocation2 + $0x1e8] sm:$0xff] }
  0xa3   : > { %616 = vmatpush2.msra.mxu0 %v297_v57  ;;  %1982 = vmatprep.mubr.msk.f32.mxu1 %vm438_vm0, %v380_v60  ;;  %v376_v57 = vld [vmem:[#allocation2 + $0x1d0] sm:$0xff]  ;;  %v378_v60 = vld [vmem:[#allocation2 + $0x1e0] sm:$0xff] }
  0xa4   : > { %617 = vmatprep.subr.mxu0 %v2324_v0  ;;  %2012 = vmatprep.subr.mxu1 %v1090_v54 }
  0xa5   : > { %618 = vmatpush2.msra.mxu0 %v296_v58  ;;  %2013 = vmatpush3.msra.mxu1 %v1090_v54  ;;  %v375_v58 = vld [vmem:[#allocation2 + $0x1c8] sm:$0xff] }
  0xa6   : > { %619 = vmatprep.subr.mxu0 %v2324_v0  ;;  %1983 = vmatmul.mubr.msk.f32.gmra.mxu1 %vm438_vm0, %v383_v63  ;;  %v385_v63 = vld [vmem:[#allocation2 + $0x218] sm:$0xff] }
  0xa7   : > { %620 = vmatpush2.msra.mxu0 %v295_v61  ;;  %1985 = vmatprep.mubr.msk.f32.mxu1 %vm438_vm0, %v386_v1  ;;  %v382_v61 = vld [vmem:[#allocation2 + $0x200] sm:$0xff]  ;;  %v384_v1 = vld [vmem:[#allocation2 + $0x210] sm:$0xff] }
  0xa8   : > { %621 = vmatprep.subr.mxu0 %v2324_v0  ;;  %v324_v0 = vld [vmem:[#allocation2 + $0x30] sm:$0xff]  ;;  %2014 = vmatprep.subr.mxu1 %v1089_v55 }
  0xa9   : > { %622 = vmatpush2.msra.mxu0 %v294_v62  ;;  %2015 = vmatpush3.msra.mxu1 %v1089_v55  ;;  %v381_v62 = vld [vmem:[#allocation2 + $0x1f8] sm:$0xff] }
  0xaa   : > { %624 = vmatmul.mubr.f32.vlgmr.msra.gmra.mxu0 %v318_v2  ;;  %1986 = vmatmul.mubr.msk.f32.gmra.mxu1 %vm438_vm0, %v389_v4  ;;  %v388_v2 = vld [vmem:[#allocation2 + $0x230] sm:$0xff]  ;;  %v391_v4 = vld [vmem:[#allocation2 + $0x248] sm:$0xff] }
  0xab   : > { %628 = vmatprep.mubr.f32.mxu0 %v322_v3  ;;  %1988 = vmatprep.mubr.msk.f32.mxu1 %vm438_vm0, %v392_v5  ;;  %v387_v3 = vld [vmem:[#allocation2 + $0x228] sm:$0xff]  ;;  %v390_v5 = vld [vmem:[#allocation2 + $0x240] sm:$0xff] }
  0xae   : > { %629 = vmatmul.mubr.f32.gmra.mxu0 %v321_v6  ;;  %1989 = vmatmul.mubr.msk.f32.gmra.mxu1 %vm438_vm0, %v395_v8  ;;  %v394_v6 = vld [vmem:[#allocation2 + $0x260] sm:$0xff]  ;;  %v397_v8 = vld [vmem:[#allocation2 + $0x278] sm:$0xff] }
  0xaf   : > { %633 = vmatprep.mubr.f32.mxu0 %v325_v7  ;;  %1991 = vmatprep.mubr.msk.f32.mxu1 %vm438_vm0, %v398_v9  ;;  %v393_v7 = vld [vmem:[#allocation2 + $0x258] sm:$0xff]  ;;  %v396_v9 = vld [vmem:[#allocation2 + $0x270] sm:$0xff] }
  0xb2   : > { %634 = vmatmul.mubr.f32.gmra.mxu0 %v324_v0  ;;  %1992 = vmatmul.mubr.msk.f32.gmra.mxu1 %vm438_vm0, %v401_v11  ;;  %v400_v0 = vld [vmem:[#allocation2 + $0x290] sm:$0xff]  ;;  %v403_v11 = vld [vmem:[#allocation2 + $0x2a8] sm:$0xff] }
  0xb3   : > { %638 = vmatprep.mubr.f32.mxu0 %v328_v10  ;;  %1994 = vmatprep.mubr.msk.f32.mxu1 %vm438_vm0, %v404_v12  ;;  %v399_v10 = vld [vmem:[#allocation2 + $0x288] sm:$0xff]  ;;  %v402_v12 = vld [vmem:[#allocation2 + $0x2a0] sm:$0xff] }
  0xb6   : > { %639 = vmatmul.mubr.f32.gmra.mxu0 %v327_v13  ;;  %1995 = vmatmul.mubr.msk.f32.gmra.mxu1 %vm438_vm0, %v407_v15  ;;  %v406_v13 = vld [vmem:[#allocation2 + $0x2c0] sm:$0xff]  ;;  %v409_v15 = vld [vmem:[#allocation2 + $0x2d8] sm:$0xff] }
  0xb7   : > { %643 = vmatprep.mubr.f32.mxu0 %v331_v14  ;;  %1997 = vmatprep.mubr.msk.f32.mxu1 %vm438_vm0, %v410_v16  ;;  %v405_v14 = vld [vmem:[#allocation2 + $0x2b8] sm:$0xff]  ;;  %v408_v16 = vld [vmem:[#allocation2 + $0x2d0] sm:$0xff] }
  0xba   : > { %644 = vmatmul.mubr.f32.gmra.mxu0 %v330_v17  ;;  %1998 = vmatmul.mubr.msk.f32.gmra.mxu1 %vm438_vm0, %v413_v19  ;;  %v412_v17 = vld [vmem:[#allocation2 + $0x2f0] sm:$0xff]  ;;  %v415_v19 = vld [vmem:[#allocation2 + $0x308] sm:$0xff] }
  0xbb   : > { %648 = vmatprep.mubr.f32.mxu0 %v334_v18  ;;  %2000 = vmatprep.mubr.msk.f32.mxu1 %vm438_vm0, %v416_v20  ;;  %v411_v18 = vld [vmem:[#allocation2 + $0x2e8] sm:$0xff]  ;;  %v414_v20 = vld [vmem:[#allocation2 + $0x300] sm:$0xff] }
  0xbe   : > { %649 = vmatmul.mubr.f32.gmra.mxu0 %v333_v21  ;;  %2001 = vmatmul.mubr.msk.f32.gmra.mxu1 %vm438_vm0, %v419_v23  ;;  %v418_v21 = vld [vmem:[#allocation2 + $0x320] sm:$0xff]  ;;  %v421_v23 = vld [vmem:[#allocation2 + $0x338] sm:$0xff] }
  0xbf   : > { %653 = vmatprep.mubr.f32.mxu0 %v337_v22  ;;  %2003 = vmatprep.mubr.msk.f32.mxu1 %vm438_vm0, %v422_v24  ;;  %v417_v22 = vld [vmem:[#allocation2 + $0x318] sm:$0xff]  ;;  %v420_v24 = vld [vmem:[#allocation2 + $0x330] sm:$0xff] }
  0xc2   : > { %654 = vmatmul.mubr.f32.gmra.mxu0 %v336_v25  ;;  %2004 = vmatmul.mubr.msk.f32.gmra.mxu1 %vm438_vm0, %v425_v27  ;;  %v424_v25 = vld [vmem:[#allocation2 + $0x350] sm:$0xff]  ;;  %v427_v27 = vld [vmem:[#allocation2 + $0x368] sm:$0xff] }
  0xc3   : > { %658 = vmatprep.mubr.f32.mxu0 %v340_v26  ;;  %2006 = vmatprep.mubr.msk.f32.mxu1 %vm438_vm0, %v428_v28  ;;  %v423_v26 = vld [vmem:[#allocation2 + $0x348] sm:$0xff]  ;;  %v426_v28 = vld [vmem:[#allocation2 + $0x360] sm:$0xff] }
  0xc6   : > { %659 = vmatmul.mubr.f32.gmra.mxu0 %v339_v29  ;;  %2007 = vmatmul.mubr.msk.f32.gmra.mxu1 %vm438_vm0, %v431_v31  ;;  %v430_v29 = vld [vmem:[#allocation2 + $0x380] sm:$0xff]  ;;  %v433_v31 = vld [vmem:[#allocation2 + $0x398] sm:$0xff] }
  0xc7   : > { %663 = vmatprep.mubr.f32.mxu0 %v343_v30  ;;  %2009 = vmatprep.mubr.msk.f32.mxu1 %vm438_vm0, %v434_v32  ;;  %v429_v30 = vld [vmem:[#allocation2 + $0x378] sm:$0xff]  ;;  %v432_v32 = vld [vmem:[#allocation2 + $0x390] sm:$0xff] }
  0xca   : > { %664 = vmatmul.mubr.f32.gmra.mxu0 %v342_v33  ;;  %2010 = vmatmul.mubr.msk.f32.gmra.mxu1 %vm438_vm0, %v437_v35  ;;  %v436_v33 = vld [vmem:[#allocation2 + $0x3b0] sm:$0xff] }
  0xcb   : > { %668 = vmatprep.mubr.f32.mxu0 %v346_v34  ;;  %v435_v34 = vld [vmem:[#allocation2 + $0x3a8] sm:$0xff] }
  0xce   : > { %669 = vmatmul.mubr.f32.gmra.mxu0 %v345_v36 }
  0xcf   : > { %673 = vmatprep.mubr.f32.mxu0 %v349_v37 }
  0xd2   : > { %674 = vmatmul.mubr.f32.gmra.mxu0 %v348_v38 }
  0xd3   : > { %678 = vmatprep.mubr.f32.mxu0 %v352_v39 }
  0xd6   : > { %679 = vmatmul.mubr.f32.gmra.mxu0 %v351_v40 }
  0xd7   : > { %683 = vmatprep.mubr.f32.mxu0 %v355_v41 }
  0xda   : > { %684 = vmatmul.mubr.f32.gmra.mxu0 %v354_v42 }
  0xdb   : > { %688 = vmatprep.mubr.f32.mxu0 %v358_v43 }
  0xde   : > { %689 = vmatmul.mubr.f32.gmra.mxu0 %v357_v44 }
  0xdf   : > { %693 = vmatprep.mubr.f32.mxu0 %v361_v45 }
  0xe2   : > { %694 = vmatmul.mubr.f32.gmra.mxu0 %v360_v46 }
  0xe3   : > { %698 = vmatprep.mubr.f32.mxu0 %v364_v47 }
  0xe6   : > { %699 = vmatmul.mubr.f32.gmra.mxu0 %v363_v48 }
  0xe7   : > { %703 = vmatprep.mubr.f32.mxu0 %v367_v49 }
  0xea   : > { %704 = vmatmul.mubr.f32.gmra.mxu0 %v366_v50 }
  0xeb   : > { %708 = vmatprep.mubr.f32.mxu0 %v370_v51 }
  0xee   : > { %709 = vmatmul.mubr.f32.gmra.mxu0 %v369_v52 }
  0xef   : > { %713 = vmatprep.mubr.f32.mxu0 %v373_v53 }
  0xf2   : > { %714 = vmatmul.mubr.f32.gmra.mxu0 %v372_v56 }
  0xf3   : > { %718 = vmatprep.mubr.f32.mxu0 %v376_v57 }
  0xf6   : > { %719 = vmatmul.mubr.f32.gmra.mxu0 %v375_v58 }
  0xf7   : > { %723 = vmatprep.mubr.f32.mxu0 %v379_v59 }
  0xfa   : > { %724 = vmatmul.mubr.f32.gmra.mxu0 %v378_v60 }
  0xfb   : > { %728 = vmatprep.mubr.f32.mxu0 %v382_v61 }
  0xfe   : > { %729 = vmatmul.mubr.f32.gmra.mxu0 %v381_v62 }
  0xff   : > { %733 = vmatprep.mubr.f32.mxu0 %v385_v63 }
 0x102   : > { %734 = vmatmul.mubr.f32.gmra.mxu0 %v384_v1 }
 0x103   : > { %738 = vmatprep.mubr.f32.mxu0 %v388_v2 }
 0x106   : > { %739 = vmatmul.mubr.f32.gmra.mxu0 %v387_v3 }
 0x107   : > { %743 = vmatprep.mubr.f32.mxu0 %v391_v4 }
 0x10a   : > { %744 = vmatmul.mubr.f32.gmra.mxu0 %v390_v5 }
 0x10b   : > { %748 = vmatprep.mubr.f32.mxu0 %v394_v6 }
 0x10e   : > { %749 = vmatmul.mubr.f32.gmra.mxu0 %v393_v7 }
 0x10f   : > { %753 = vmatprep.mubr.f32.mxu0 %v397_v8 }
 0x112   : > { %754 = vmatmul.mubr.f32.gmra.mxu0 %v396_v9 }
 0x113   : > { %758 = vmatprep.mubr.f32.mxu0 %v400_v0 }
 0x116   : > { %759 = vmatmul.mubr.f32.gmra.mxu0 %v399_v10 }
 0x117   : > { %763 = vmatprep.mubr.f32.mxu0 %v403_v11 }
 0x11a   : > { %764 = vmatmul.mubr.f32.gmra.mxu0 %v402_v12 }
 0x11b   : > { %768 = vmatprep.mubr.f32.mxu0 %v406_v13 }
 0x11e   : > { %769 = vmatmul.mubr.f32.gmra.mxu0 %v405_v14 }
 0x11f   : > { %773 = vmatprep.mubr.f32.mxu0 %v409_v15 }
 0x122   : > { %774 = vmatmul.mubr.f32.gmra.mxu0 %v408_v16 }
 0x123   : > { %778 = vmatprep.mubr.f32.mxu0 %v412_v17 }
 0x126   : > { %779 = vmatmul.mubr.f32.gmra.mxu0 %v411_v18 }
 0x127   : > { %783 = vmatprep.mubr.f32.mxu0 %v415_v19 }
 0x12a   : > { %784 = vmatmul.mubr.f32.gmra.mxu0 %v414_v20 }
 0x12b   : > { %788 = vmatprep.mubr.f32.mxu0 %v418_v21 }
 0x12e   : > { %789 = vmatmul.mubr.f32.gmra.mxu0 %v417_v22 }
 0x12f   : > { %793 = vmatprep.mubr.f32.mxu0 %v421_v23 }
 0x132   : > { %794 = vmatmul.mubr.f32.gmra.mxu0 %v420_v24 }
 0x133   : > { %798 = vmatprep.mubr.f32.mxu0 %v424_v25 }
 0x136   : > { %799 = vmatmul.mubr.f32.gmra.mxu0 %v423_v26 }
 0x137   : > { %803 = vmatprep.mubr.f32.mxu0 %v427_v27 }
 0x13a   : > { %804 = vmatmul.mubr.f32.gmra.mxu0 %v426_v28 }
 0x13b   : > { %808 = vmatprep.mubr.f32.mxu0 %v430_v29 }
 0x13e   : > { %809 = vmatmul.mubr.f32.gmra.mxu0 %v429_v30  ;;  %v1954_v35 = vpop.f32.mrf.mxu1 }
 0x13f   : > { %813 = vmatprep.mubr.f32.mxu0 %v433_v31 }
 0x140   : > { %v890_v36 = vpop.f32.mrf.mxu1 }
 0x142   : > { %814 = vmatmul.mubr.f32.gmra.mxu0 %v432_v32  ;;  %v1957_v40 = vpop.f32.mrf.mxu1 }
 0x143   : > { %818 = vmatprep.mubr.f32.mxu0 %v436_v33 }
 0x144   : > { %v900_v44 = vpop.f32.mrf.mxu1 }
 0x146   : > { %819 = vmatmul.mubr.f32.gmra.mxu0 %v435_v34  ;;  %v1960_v48 = vpop.f32.mrf.mxu1 }
 0x148   : > { %v910_v52 = vpop.f32.mrf.mxu1 }
 0x14a   : > { %v1963_v56 = vpop.f32.mrf.mxu1 }
 0x14c   : > { %v920_v60 = vpop.f32.mrf.mxu1 }
 0x14e   : > { %v1966_v1 = vpop.f32.mrf.mxu1 }
 0x150   : > { %v930_v5 = vpop.f32.mrf.mxu1 }
 0x152   : > { %v1969_v9 = vpop.f32.mrf.mxu1 }
 0x154   : > { %v940_v12 = vpop.f32.mrf.mxu1 }
 0x156   : > { %v1972_v16 = vpop.f32.mrf.mxu1 }
 0x158   : > { %v950_v20 = vpop.f32.mrf.mxu1 }
 0x15a   : > { %v1975_v24 = vpop.f32.mrf.mxu1 }
 0x15c   : > { %v960_v28 = vpop.f32.mrf.mxu1 }
 0x15e   : > { %v1978_v32 = vpop.f32.mrf.mxu1 }
 0x16a   : > { %v625_v37 = vpop.f32.mrf.mxu0 }
 0x16b   : > { %v891_v38 = vadd.f32 %v890_v36, %v625_v37  ;;  %v970_v36 = vpop.f32.mrf.mxu1 }
 0x16c   : > { %v627_v39 = vpop.f32.mrf.mxu0 }
 0x16d   : > { %2016 = vmatprep.mubr.msk.f32.mxu1 %vm1091_vm1, %v891_v38 }
 0x16e   : > { %v630_v41 = vpop.f32.mrf.mxu0 }
 0x16f   : > { %v896_v42 = vadd.f32 %v1954_v35, %v630_v41 }
 0x170   : > { %v632_v43 = vpop.f32.mrf.mxu0 }
 0x171   : > { %2017 = vmatmul.mubr.msk.f32.vlgmr.msra.gmra.mxu1 %vm1091_vm1, %v896_v42 }
 0x172   : > { %v635_v45 = vpop.f32.mrf.mxu0 }
 0x173   : > { %v901_v46 = vadd.f32 %v900_v44, %v635_v45 }
 0x174   : > { %v637_v47 = vpop.f32.mrf.mxu0 }
 0x175   : > { %2019 = vmatprep.mubr.msk.f32.mxu1 %vm1091_vm1, %v901_v46 }
 0x176   : > { %v640_v49 = vpop.f32.mrf.mxu0 }
 0x177   : > { %v906_v50 = vadd.f32 %v1957_v40, %v640_v49  ;;  %v1981_v40 = vpop.f32.mrf.mxu1 }
 0x178   : > { %v642_v51 = vpop.f32.mrf.mxu0 }
 0x179   : > { %2020 = vmatmul.mubr.msk.f32.gmra.mxu1 %vm1091_vm1, %v906_v50  ;;  %v980_v44 = vpop.f32.mrf.mxu1 }
 0x17a   : > { %v645_v53 = vpop.f32.mrf.mxu0 }
 0x17b   : > { %v911_v54 = vadd.f32 %v910_v52, %v645_v53 }
 0x17c   : > { %v647_v55 = vpop.f32.mrf.mxu0 }
 0x17d   : > { %2022 = vmatprep.mubr.msk.f32.mxu1 %vm1091_vm1, %v911_v54 }
 0x17e   : > { %v650_v57 = vpop.f32.mrf.mxu0 }
 0x17f   : > { %v916_v58 = vadd.f32 %v1960_v48, %v650_v57  ;;  %v1984_v48 = vpop.f32.mrf.mxu1 }
 0x180   : > { %v652_v59 = vpop.f32.mrf.mxu0 }
 0x181   : > { %2023 = vmatmul.mubr.msk.f32.gmra.mxu1 %vm1091_vm1, %v916_v58  ;;  %v990_v52 = vpop.f32.mrf.mxu1 }
 0x182   : > { %v655_v61 = vpop.f32.mrf.mxu0 }
 0x183   : > { %v921_v62 = vadd.f32 %v920_v60, %v655_v61 }
 0x184   : > { %v657_v63 = vpop.f32.mrf.mxu0 }
 0x185   : > { %2025 = vmatprep.mubr.msk.f32.mxu1 %vm1091_vm1, %v921_v62 }
 0x186   : > { %v660_v2 = vpop.f32.mrf.mxu0 }
 0x187   : > { %v926_v3 = vadd.f32 %v1963_v56, %v660_v2  ;;  %v1987_v56 = vpop.f32.mrf.mxu1 }
 0x188   : > { %v662_v4 = vpop.f32.mrf.mxu0 }
 0x189   : > { %2026 = vmatmul.mubr.msk.f32.gmra.mxu1 %vm1091_vm1, %v926_v3  ;;  %v1000_v60 = vpop.f32.mrf.mxu1 }
 0x18a   : > { %v665_v6 = vpop.f32.mrf.mxu0 }
 0x18b   : > { %v931_v7 = vadd.f32 %v930_v5, %v665_v6 }
 0x18c   : > { %v667_v8 = vpop.f32.mrf.mxu0 }
 0x18d   : > { %2028 = vmatprep.mubr.msk.f32.mxu1 %vm1091_vm1, %v931_v7 }
 0x18e   : > { %v670_v0 = vpop.f32.mrf.mxu0 }
 0x18f   : > { %v936_v10 = vadd.f32 %v1966_v1, %v670_v0  ;;  %v1990_v1 = vpop.f32.mrf.mxu1 }
 0x190   : > { %v672_v11 = vpop.f32.mrf.mxu0 }
 0x191   : > { %2029 = vmatmul.mubr.msk.f32.gmra.mxu1 %vm1091_vm1, %v936_v10  ;;  %v1010_v5 = vpop.f32.mrf.mxu1 }
 0x192   : > { %v675_v13 = vpop.f32.mrf.mxu0 }
 0x193   : > { %v941_v14 = vadd.f32 %v940_v12, %v675_v13 }
 0x194   : > { %v677_v15 = vpop.f32.mrf.mxu0 }
 0x195   : > { %2031 = vmatprep.mubr.msk.f32.mxu1 %vm1091_vm1, %v941_v14 }
 0x196   : > { %v680_v17 = vpop.f32.mrf.mxu0 }
 0x197   : > { %v946_v18 = vadd.f32 %v1969_v9, %v680_v17  ;;  %v1993_v9 = vpop.f32.mrf.mxu1 }
 0x198   : > { %v682_v19 = vpop.f32.mrf.mxu0 }
 0x199   : > { %2032 = vmatmul.mubr.msk.f32.gmra.mxu1 %vm1091_vm1, %v946_v18  ;;  %v1020_v12 = vpop.f32.mrf.mxu1 }
 0x19a   : > { %v685_v21 = vpop.f32.mrf.mxu0 }
 0x19b   : > { %v951_v22 = vadd.f32 %v950_v20, %v685_v21 }
 0x19c   : > { %v687_v23 = vpop.f32.mrf.mxu0 }
 0x19d   : > { %2034 = vmatprep.mubr.msk.f32.mxu1 %vm1091_vm1, %v951_v22 }
 0x19e   : > { %v690_v25 = vpop.f32.mrf.mxu0 }
 0x19f   : > { %v956_v26 = vadd.f32 %v1972_v16, %v690_v25  ;;  %v1996_v16 = vpop.f32.mrf.mxu1 }
 0x1a0   : > { %v692_v27 = vpop.f32.mrf.mxu0 }
 0x1a1   : > { %2035 = vmatmul.mubr.msk.f32.gmra.mxu1 %vm1091_vm1, %v956_v26  ;;  %v1030_v20 = vpop.f32.mrf.mxu1 }
 0x1a2   : > { %v695_v29 = vpop.f32.mrf.mxu0 }
 0x1a3   : > { %v961_v30 = vadd.f32 %v960_v28, %v695_v29 }
 0x1a4   : > { %v697_v31 = vpop.f32.mrf.mxu0 }
 0x1a5   : > { %2037 = vmatprep.mubr.msk.f32.mxu1 %vm1091_vm1, %v961_v30 }
 0x1a6   : > { %v700_v33 = vpop.f32.mrf.mxu0 }
 0x1a7   : > { %v966_v34 = vadd.f32 %v1975_v24, %v700_v33  ;;  %v1999_v24 = vpop.f32.mrf.mxu1 }
 0x1a8   : > { %v702_v35 = vpop.f32.mrf.mxu0 }
 0x1a9   : > { %2038 = vmatmul.mubr.msk.f32.gmra.mxu1 %vm1091_vm1, %v966_v34  ;;  %v1040_v28 = vpop.f32.mrf.mxu1 }
 0x1aa   : > { %v705_v37 = vpop.f32.mrf.mxu0 }
 0x1ab   : > { %v971_v38 = vadd.f32 %v970_v36, %v705_v37 }
 0x1ac   : > { %v707_v39 = vpop.f32.mrf.mxu0 }
 0x1ad   : > { %2040 = vmatprep.mubr.msk.f32.mxu1 %vm1091_vm1, %v971_v38 }
 0x1ae   : > { %v710_v41 = vpop.f32.mrf.mxu0 }
 0x1af   : > { %v976_v42 = vadd.f32 %v1978_v32, %v710_v41  ;;  %v2002_v32 = vpop.f32.mrf.mxu1 }
 0x1b0   : > { %v712_v43 = vpop.f32.mrf.mxu0 }
 0x1b1   : > { %2041 = vmatmul.mubr.msk.f32.gmra.mxu1 %vm1091_vm1, %v976_v42  ;;  %v1050_v36 = vpop.f32.mrf.mxu1 }
 0x1b2   : > { %v715_v45 = vpop.f32.mrf.mxu0 }
 0x1b3   : > { %v981_v46 = vadd.f32 %v980_v44, %v715_v45 }
 0x1b4   : > { %v717_v47 = vpop.f32.mrf.mxu0 }
 0x1b5   : > { %2043 = vmatprep.mubr.msk.f32.mxu1 %vm1091_vm1, %v981_v46 }
 0x1b6   : > { %v720_v49 = vpop.f32.mrf.mxu0 }
 0x1b7   : > { %v986_v50 = vadd.f32 %v1981_v40, %v720_v49  ;;  %v2005_v40 = vpop.f32.mrf.mxu1 }
 0x1b8   : > { %v722_v51 = vpop.f32.mrf.mxu0 }
 0x1b9   : > { %2044 = vmatmul.mubr.msk.f32.gmra.mxu1 %vm1091_vm1, %v986_v50  ;;  %v1060_v44 = vpop.f32.mrf.mxu1 }
 0x1ba   : > { %v725_v53 = vpop.f32.mrf.mxu0 }
 0x1bb   : > { %v991_v54 = vadd.f32 %v990_v52, %v725_v53 }
 0x1bc   : > { %v727_v55 = vpop.f32.mrf.mxu0 }
 0x1bd   : > { %2046 = vmatprep.mubr.msk.f32.mxu1 %vm1091_vm1, %v991_v54 }
 0x1be   : > { %v730_v57 = vpop.f32.mrf.mxu0 }
 0x1bf   : > { %v996_v58 = vadd.f32 %v1984_v48, %v730_v57  ;;  %v2008_v48 = vpop.f32.mrf.mxu1 }
 0x1c0   : > { %v732_v59 = vpop.f32.mrf.mxu0 }
 0x1c1   : > { %2047 = vmatmul.mubr.msk.f32.gmra.mxu1 %vm1091_vm1, %v996_v58  ;;  %v1070_v52 = vpop.f32.mrf.mxu1 }
 0x1c2   : > { %v735_v61 = vpop.f32.mrf.mxu0 }
 0x1c3   : > { %v1001_v62 = vadd.f32 %v1000_v60, %v735_v61 }
 0x1c4   : > { %v737_v63 = vpop.f32.mrf.mxu0 }
 0x1c5   : > { %2049 = vmatprep.mubr.msk.f32.mxu1 %vm1091_vm1, %v1001_v62 }
 0x1c6   : > { %v740_v2 = vpop.f32.mrf.mxu0 }
 0x1c7   : > { %v1006_v3 = vadd.f32 %v1987_v56, %v740_v2  ;;  %v2011_v56 = vpop.f32.mrf.mxu1 }
 0x1c8   : > { %v742_v4 = vpop.f32.mrf.mxu0 }
 0x1c9   : > { %2050 = vmatmul.mubr.msk.f32.gmra.mxu1 %vm1091_vm1, %v1006_v3  ;;  %v1080_v60 = vpop.f32.mrf.mxu1 }
 0x1ca   : > { %v745_v6 = vpop.f32.mrf.mxu0 }
 0x1cb   : > { %v1011_v7 = vadd.f32 %v1010_v5, %v745_v6 }
 0x1cc   : > { %v747_v8 = vpop.f32.mrf.mxu0 }
 0x1cd   : > { %2052 = vmatprep.mubr.msk.f32.mxu1 %vm1091_vm1, %v1011_v7 }
 0x1ce   : > { %v750_v0 = vpop.f32.mrf.mxu0 }
 0x1cf   : > { %v1016_v10 = vadd.f32 %v1990_v1, %v750_v0 }
 0x1d0   : > { %v752_v11 = vpop.f32.mrf.mxu0 }
 0x1d1   : > { %2053 = vmatmul.mubr.msk.f32.gmra.mxu1 %vm1091_vm1, %v1016_v10 }
 0x1d2   : > { %v755_v13 = vpop.f32.mrf.mxu0 }
 0x1d3   : > { %v1021_v14 = vadd.f32 %v1020_v12, %v755_v13 }
 0x1d4   : > { %v757_v15 = vpop.f32.mrf.mxu0 }
 0x1d5   : > { %2055 = vmatprep.mubr.msk.f32.mxu1 %vm1091_vm1, %v1021_v14 }
 0x1d6   : > { %v760_v17 = vpop.f32.mrf.mxu0 }
 0x1d7   : > { %v1026_v18 = vadd.f32 %v1993_v9, %v760_v17 }
 0x1d8   : > { %v762_v19 = vpop.f32.mrf.mxu0 }
 0x1d9   : > { %2056 = vmatmul.mubr.msk.f32.gmra.mxu1 %vm1091_vm1, %v1026_v18 }
 0x1da   : > { %v765_v21 = vpop.f32.mrf.mxu0 }
 0x1db   : > { %v1031_v22 = vadd.f32 %v1030_v20, %v765_v21 }
 0x1dc   : > { %v767_v23 = vpop.f32.mrf.mxu0 }
 0x1dd   : > { %2058 = vmatprep.mubr.msk.f32.mxu1 %vm1091_vm1, %v1031_v22 }
 0x1de   : > { %v770_v25 = vpop.f32.mrf.mxu0 }
 0x1df   : > { %v1036_v26 = vadd.f32 %v1996_v16, %v770_v25 }
 0x1e0   : > { %v772_v27 = vpop.f32.mrf.mxu0 }
 0x1e1   : > { %2059 = vmatmul.mubr.msk.f32.gmra.mxu1 %vm1091_vm1, %v1036_v26 }
 0x1e2   : > { %v775_v29 = vpop.f32.mrf.mxu0 }
 0x1e3   : > { %v1041_v30 = vadd.f32 %v1040_v28, %v775_v29 }
 0x1e4   : > { %v777_v31 = vpop.f32.mrf.mxu0 }
 0x1e5   : > { %2061 = vmatprep.mubr.msk.f32.mxu1 %vm1091_vm1, %v1041_v30 }
 0x1e6   : > { %v780_v33 = vpop.f32.mrf.mxu0 }
 0x1e7   : > { %v1046_v34 = vadd.f32 %v1999_v24, %v780_v33 }
 0x1e8   : > { %v782_v35 = vpop.f32.mrf.mxu0 }
 0x1e9   : > { %2062 = vmatmul.mubr.msk.f32.gmra.mxu1 %vm1091_vm1, %v1046_v34 }
 0x1ea   : > { %v785_v37 = vpop.f32.mrf.mxu0 }
 0x1eb   : > { %v1051_v38 = vadd.f32 %v1050_v36, %v785_v37 }
 0x1ec   : > { %v787_v39 = vpop.f32.mrf.mxu0 }
 0x1ed   : > { %2064 = vmatprep.mubr.msk.f32.mxu1 %vm1091_vm1, %v1051_v38 }
 0x1ee   : > { %v790_v41 = vpop.f32.mrf.mxu0 }
 0x1ef   : > { %v1056_v42 = vadd.f32 %v2002_v32, %v790_v41 }
 0x1f0   : > { %v792_v43 = vpop.f32.mrf.mxu0 }
 0x1f1   : > { %2065 = vmatmul.mubr.msk.f32.gmra.mxu1 %vm1091_vm1, %v1056_v42 }
 0x1f2   : > { %v795_v45 = vpop.f32.mrf.mxu0 }
 0x1f3   : > { %v1061_v46 = vadd.f32 %v1060_v44, %v795_v45 }
 0x1f4   : > { %v797_v47 = vpop.f32.mrf.mxu0 }
 0x1f5   : > { %2067 = vmatprep.mubr.msk.f32.mxu1 %vm1091_vm1, %v1061_v46 }
 0x1f6   : > { %v800_v49 = vpop.f32.mrf.mxu0 }
 0x1f7   : > { %v1066_v50 = vadd.f32 %v2005_v40, %v800_v49 }
 0x1f8   : > { %v802_v51 = vpop.f32.mrf.mxu0 }
 0x1f9   : > { %2068 = vmatmul.mubr.msk.f32.gmra.mxu1 %vm1091_vm1, %v1066_v50 }
 0x1fa   : > { %v805_v53 = vpop.f32.mrf.mxu0 }
 0x1fb   : > { %v1071_v54 = vadd.f32 %v1070_v52, %v805_v53 }
 0x1fc   : > { %v807_v55 = vpop.f32.mrf.mxu0 }
 0x1fd   : > { %2070 = vmatprep.mubr.msk.f32.mxu1 %vm1091_vm1, %v1071_v54 }
 0x1fe   : > { %v810_v57 = vpop.f32.mrf.mxu0 }
 0x1ff   : > { %v1076_v58 = vadd.f32 %v2008_v48, %v810_v57 }
 0x200   : > { %v812_v59 = vpop.f32.mrf.mxu0 }
 0x201   : > { %2071 = vmatmul.mubr.msk.f32.gmra.mxu1 %vm1091_vm1, %v1076_v58 }
 0x202   : > { %v815_v61 = vpop.f32.mrf.mxu0 }
 0x203   : > { %v1081_v62 = vadd.f32 %v1080_v60, %v815_v61 }
 0x204   : > { %v817_v63 = vpop.f32.mrf.mxu0 }
 0x205   : > { %2073 = vmatprep.mubr.msk.f32.mxu1 %vm1091_vm1, %v1081_v62 }
 0x206   : > { %v820_v1 = vpop.f32.mrf.mxu0 }
 0x207   : > { %v1086_v2 = vadd.f32 %v2011_v56, %v820_v1 }
 0x208   : > { %v822_v3 = vpop.f32.mrf.mxu0 }
 0x209   : > { %2074 = vmatmul.mubr.msk.f32.gmra.mxu1 %vm1091_vm1, %v1086_v2 }
 0x231   : > { %v2018_v4 = vpop.f32.mrf.mxu1 }
 0x232   : > { %v1478_v30 = vmul.f32 %v2018_v4, %v2018_v4 }
 0x233   : > { %v2753_v5 = vpop.f32.mrf.mxu1 }
 0x234   : > { %v1477_v33 = vmul.f32 %v2753_v5, %v2753_v5 }
 0x239   : > { %v2755_v6 = vpop.f32.mrf.mxu1 }
 0x23a   : > { %v1480_v46 = vmul.f32 %v2755_v6, %v2755_v6 }
 0x23b   : > { %v2757_v7 = vpop.f32.mrf.mxu1 }
 0x23c   : > { %v1479_v49 = vmul.f32 %v2757_v7, %v2757_v7 }
 0x241   : > { %v2759_v8 = vpop.f32.mrf.mxu1 }
 0x242   : > { %v1482_v3 = vmul.f32 %v2759_v8, %v2759_v8 }
 0x243   : > { %v2761_v9 = vpop.f32.mrf.mxu1 }
 0x249   : > { %v2763_v0 = vpop.f32.mrf.mxu1 }
 0x24b   : > { %v2765_v10 = vpop.f32.mrf.mxu1 }
 0x251   : > { %v2030_v11 = vpop.f32.mrf.mxu1 }
 0x252   : > { %v1486_v28 = vmul.f32 %v2030_v11, %v2030_v11  ;;  %v1494_v59 = vmul.f32 %v2030_v11, %v2018_v4 }
 0x253   : > { %v2767_v12 = vpop.f32.mrf.mxu1 }
 0x254   : > { %v1485_v31 = vmul.f32 %v2767_v12, %v2767_v12  ;;  %v1566_v39 = vadd.f32 %v1486_v28, %v1478_v30 }
 0x256   : > { %v1565_v43 = vadd.f32 %v1485_v31, %v1477_v33  ;;  %v1574_v50 = vadd.f32 0.0001, %v1566_v39 }
 0x258   : > { %v1573_v54 = vadd.f32 0.0001, %v1565_v43 }
 0x259   : > { %v2769_v13 = vpop.f32.mrf.mxu1 }
 0x25a   : > { %v1488_v41 = vmul.f32 %v2769_v13, %v2769_v13 }
 0x25b   : > { %v2771_v14 = vpop.f32.mrf.mxu1 }
 0x25c   : > { %v1487_v44 = vmul.f32 %v2771_v14, %v2771_v14  ;;  %v1568_v63 = vadd.f32 %v1488_v41, %v1480_v46 }
 0x261   : > { %v2773_v15 = vpop.f32.mrf.mxu1 }
 0x262   : > { %v1490_v60 = vmul.f32 %v2773_v15, %v2773_v15 }
 0x263   : > { %v2775_v16 = vpop.f32.mrf.mxu1 }
 0x264   : > { %v1489_v1 = vmul.f32 %v2775_v16, %v2775_v16 }
 0x269   : > { %v2777_v17 = vpop.f32.mrf.mxu1 }
 0x26b   : > { %v2779_v18 = vpop.f32.mrf.mxu1 }
 0x271   : > { %v2042_v19 = vpop.f32.mrf.mxu1 }
 0x272   : > { %v1502_v34 = vsub.f32 %v2042_v19, %v1478_v30  ;;  %v1567_v19 = vadd.f32 %v1487_v44, %v1479_v49  ;;  %v1576_v30 = vadd.f32 0.0001, %v1568_v63 }
 0x273   : > { %v1358_v20 = vpop.f32.mrf.mxu1 }
 0x274   : > { %v1501_v37 = vsub.f32 %v1358_v20, %v1477_v33  ;;  %v1496_v33 = vmul.f32 %v2769_v13, %v2755_v6  ;;  %v1492_v6 = vmul.f32 %v2777_v17, %v2777_v17  ;;  %v1491_v13 = vmul.f32 %v2779_v18, %v2779_v18 }
 0x279   : > { %v2045_v21 = vpop.f32.mrf.mxu1 }
 0x27a   : > { %v1504_v53 = vsub.f32 %v2045_v21, %v1480_v46  ;;  %v1481_v21 = vmul.f32 %v2761_v9, %v2761_v9 }
 0x27b   : > { %v1368_v22 = vpop.f32.mrf.mxu1 }
 0x27c   : > { %v1503_v55 = vsub.f32 %v1368_v22, %v1479_v49  ;;  %v1526_v22 = vmul.f32 2.0, %v1494_v59 }
 0x281   : > { %v2048_v23 = vpop.f32.mrf.mxu1 }
 0x283   : > { %v2781_v24 = vpop.f32.mrf.mxu1 }
 0x289   : > { %v2783_v25 = vpop.f32.mrf.mxu1 }
 0x28b   : > { %v2785_v26 = vpop.f32.mrf.mxu1 }
 0x291   : > { %v2054_v27 = vpop.f32.mrf.mxu1 }
 0x292   : > { %v1510_v32 = vsub.f32 %v2054_v27, %v1486_v28  ;;  %v1506_v27 = vsub.f32 %v2048_v23, %v1482_v3  ;;  %v1483_v23 = vmul.f32 %v2765_v10, %v2765_v10 }
 0x293   : > { %v1398_v29 = vpop.f32.mrf.mxu1 }
 0x294   : > { %v1509_v35 = vsub.f32 %v1398_v29, %v1485_v31  ;;  %v1582_v38 = vadd.f32 %v1510_v32, %v1502_v34  ;;  %v1493_v29 = vmul.f32 %v2767_v12, %v2753_v5  ;;  %v1505_v31 = vsub.f32 %v2781_v24, %v1481_v21 }
 0x295   : > { %v1575_v34 = vadd.f32 0.0001, %v1567_v19  ;;  %v1570_v5 = vadd.f32 %v1490_v60, %v1482_v3 }
 0x296   : > { %v1581_v40 = vadd.f32 %v1509_v35, %v1501_v37  ;;  %v1590_v45 = vadd.f32 0.0009, %v1582_v38  ;;  %v1525_v24 = vmul.f32 2.0, %v1493_v29 }
 0x298   : > { %v1589_v51 = vadd.f32 0.0009, %v1581_v40  ;;  %v1598_v56 = vmul.f32 %v1590_v45, %v1574_v50  ;;  %v1534_v40 = vadd.f32 0.0001, %v1526_v22  ;;  %v1571_v22 = vadd.f32 %v1491_v13, %v1483_v23 }
 0x299   : > { %v2057_v36 = vpop.f32.mrf.mxu1 }
 0x29a   : > { %v1512_v47 = vsub.f32 %v2057_v36, %v1488_v41  ;;  %v1597_v61 = vmul.f32 %v1589_v51, %v1573_v54  ;;  %2148 = vrcp.f32 %v1598_v56  ;;  %v1484_v36 = vmul.f32 %v2763_v0, %v2763_v0 }
 0x29b   : > { %v1408_v42 = vpop.f32.mrf.mxu1  ;;  %v1578_v51 = vadd.f32 0.0001, %v1570_v5  ;;  %v1495_v54 = vmul.f32 %v2771_v14, %v2757_v7 }
 0x29c   : > { %v1511_v52 = vsub.f32 %v1408_v42, %v1487_v44  ;;  %v1584_v57 = vadd.f32 %v1512_v47, %v1504_v53  ;;  %2150 = vrcp.f32 %v1597_v61  ;;  %v1569_v42 = vadd.f32 %v1489_v1, %v1481_v21 }
 0x29d   : > { %v1528_v44 = vmul.f32 2.0, %v1496_v33  ;;  %v1508_v56 = vsub.f32 %v2783_v25, %v1484_v36  ;;  %v1527_v7 = vmul.f32 2.0, %v1495_v54  ;;  %v1572_v14 = vadd.f32 %v1492_v6, %v1484_v36 }
 0x29e   : > { %v1583_v62 = vadd.f32 %v1511_v52, %v1503_v55  ;;  %v1592_v4 = vadd.f32 0.0009, %v1584_v57  ;;  %v1577_v55 = vadd.f32 0.0001, %v1569_v42  ;;  %v1507_v57 = vsub.f32 %v2785_v26, %v1483_v23 }
 0x29f   : > { %v1497_v36 = vmul.f32 %v2775_v16, %v2761_v9  ;;  %v1580_v23 = vadd.f32 0.0001, %v1572_v14 }
 0x2a0   : > { %v1591_v28 = vadd.f32 0.0009, %v1583_v62  ;;  %v1600_v37 = vmul.f32 %v1592_v4, %v1576_v30 }
 0x2a1   : > { %v2060_v48 = vpop.f32.mrf.mxu1 }
 0x2a2   : > { %v1514_v20 = vsub.f32 %v2060_v48, %v1490_v60  ;;  %v1599_v12 = vmul.f32 %v1591_v28, %v1575_v34  ;;  %2152 = vrcp.f32 %v1600_v37 }
 0x2a3   : > { %v1418_v58 = vpop.f32.mrf.mxu1 }
 0x2a4   : > { %v1513_v11 = vsub.f32 %v1418_v58, %v1489_v1  ;;  %v1586_v35 = vadd.f32 %v1514_v20, %v1506_v27  ;;  %2154 = vrcp.f32 %v1599_v12  ;;  %v1533_v58 = vadd.f32 0.0001, %v1525_v24 }
 0x2a6   : > { %v1585_v38 = vadd.f32 %v1513_v11, %v1505_v31  ;;  %v1594_v45 = vadd.f32 0.0009, %v1586_v35  ;;  %v1536_v11 = vadd.f32 0.0001, %v1528_v44 }
 0x2a7   : > { %v2149_v62 = vpop.eup %2148 }
 0x2a8   : > { %v1593_v48 = vadd.f32 0.0009, %v1585_v38  ;;  %v1535_v38 = vadd.f32 0.0001, %v1527_v7 }
 0x2a9   : > { %v2063_v2 = vpop.f32.mrf.mxu1  ;;  %v2151_v4 = vpop.eup %2150 }
 0x2aa   : > { %v1516_v49 = vsub.f32 %v2063_v2, %v1492_v6  ;;  %v1601_v63 = vmul.f32 %v1593_v48, %v1577_v55  ;;  %v1500_v48 = vmul.f32 %v2777_v17, %v2763_v0 }
 0x2ab   : > { %v1428_v32 = vpop.f32.mrf.mxu1 }
 0x2ac   : > { %v1515_v50 = vsub.f32 %v1428_v32, %v1491_v13  ;;  %v1588_v1 = vadd.f32 %v1516_v49, %v1508_v56  ;;  %v1532_v0 = vmul.f32 2.0, %v1500_v48 }
 0x2ae   : > { %v1587_v2 = vadd.f32 %v1515_v50, %v1507_v57  ;;  %v1596_v30 = vadd.f32 0.0009, %v1588_v1 }
 0x2b0   : > { %v1595_v31 = vadd.f32 0.0009, %v1587_v2 }
 0x2b1   : > { %v2066_v39 = vpop.f32.mrf.mxu1 }
 0x2b2   : > { %v1518_v41 = vsub.f32 %v2066_v39, %v1494_v59  ;;  %v1602_v59 = vmul.f32 %v1594_v45, %v1578_v51  ;;  %v1579_v39 = vadd.f32 0.0001, %v1571_v22 }
 0x2b3   : > { %v1438_v43 = vpop.f32.mrf.mxu1 }
 0x2b4   : > { %v1542_v46 = vmul.f32 2.0, %v1518_v41  ;;  %v1517_v47 = vsub.f32 %v1438_v43, %v1493_v29  ;;  %2156 = vrcp.f32 %v1602_v59  ;;  %v1498_v29 = vmul.f32 %v2773_v15, %v2759_v8  ;;  %v2153_v41 = vpop.eup %2152 }
 0x2b5   : > { %2158 = vrcp.f32 %v1601_v63  ;;  %v1604_v8 = vmul.f32 %v1596_v30, %v1580_v23  ;;  %v1603_v24 = vmul.f32 %v1595_v31, %v1579_v39  ;;  %v2155_v13 = vpop.eup %2154  ;;  %v1529_v43 = vmul.f32 2.0, %v1497_v36 }
 0x2b6   : > { %v1550_v52 = vadd.f32 0.0009, %v1542_v46  ;;  %v1541_v53 = vmul.f32 2.0, %v1517_v47  ;;  %v1530_v12 = vmul.f32 2.0, %v1498_v29 }
 0x2b7   : > { %2160 = vrcp.f32 %v1604_v8 }
 0x2b8   : > { %v1558_v60 = vmul.f32 %v1550_v52, %v1534_v40  ;;  %v1549_v61 = vadd.f32 0.0009, %v1541_v53  ;;  %v1538_v16 = vadd.f32 0.0001, %v1530_v12  ;;  %2162 = vrcp.f32 %v1603_v24 }
 0x2b9   : > { %v2069_v3 = vpop.f32.mrf.mxu1  ;;  %v1499_v52 = vmul.f32 %v2779_v18, %v2765_v10  ;;  %v1540_v10 = vadd.f32 0.0001, %v1532_v0 }
 0x2ba   : > { %v1614_v19 = vmul.f32 %v2149_v62, %v1558_v60  ;;  %v1557_v20 = vmul.f32 %v1549_v61, %v1533_v58  ;;  %v1520_v21 = vsub.f32 %v2069_v3, %v1496_v33 }
 0x2bb   : > { %v1448_v25 = vpop.f32.mrf.mxu1  ;;  %v1531_v63 = vmul.f32 2.0, %v1499_v52 }
 0x2bc   : > { %v1613_v26 = vmul.f32 %v2151_v4, %v1557_v20  ;;  %v1544_v27 = vmul.f32 2.0, %v1520_v21  ;;  %v1519_v28 = vsub.f32 %v1448_v25, %v1495_v54  ;;  %v1622_v32 = vsel %vm1091_vm1, %v1614_v19, 0.0 }
 0x2bd   : > { %v1537_v54 = vadd.f32 0.0001, %v1529_v43  ;;  %v1539_v7 = vadd.f32 0.0001, %v1531_v63 }
 0x2be   : > { %v1621_v33 = vsel %vm1091_vm1, %v1613_v26, 0.0  ;;  %v1552_v34 = vadd.f32 0.0009, %v1544_v27  ;;  %v1543_v35 = vmul.f32 2.0, %v1519_v28 }
 0x2bf   : > { %v1623_v37 = vadd.f32 %v1622_v32, %v1621_v33 }
 0x2c0   : > { %v1560_v40 = vmul.f32 %v1552_v34, %v1536_v11  ;;  %v1551_v5 = vadd.f32 0.0009, %v1543_v35 }
 0x2c1   : > { %v2072_v15 = vpop.f32.mrf.mxu1  ;;  %v2157_v58 = vpop.eup %2156 }
 0x2c2   : > { %v1559_v42 = vmul.f32 %v1551_v5, %v1535_v38  ;;  %v1522_v6 = vsub.f32 %v2072_v15, %v1498_v29  ;;  %v1616_v45 = vmul.f32 %v2153_v41, %v1560_v40  ;;  %v2159_v61 = vpop.eup %2158 }
 0x2c3   : > { %v1458_v44 = vpop.f32.mrf.mxu1 }
 0x2c4   : > { %v1615_v46 = vmul.f32 %v2155_v13, %v1559_v42  ;;  %v1546_v47 = vmul.f32 2.0, %v1522_v6  ;;  %v1521_v9 = vsub.f32 %v1458_v44, %v1497_v36  ;;  %v1626_v55 = vsel %vm1091_vm1, %v1616_v45, 0.0  ;;  %v2161_v27 = vpop.eup %2160 }
 0x2c5   : > { %v2163_v29 = vpop.eup %2162 }
 0x2c6   : > { %v1624_v49 = vsel %vm1091_vm1, %v1615_v46, 0.0  ;;  %v1554_v50 = vadd.f32 0.0009, %v1546_v47  ;;  %v1545_v51 = vmul.f32 2.0, %v1521_v9 }
 0x2c7   : > { %v1625_v53 = vadd.f32 %v1624_v49, %v1623_v37 }
 0x2c8   : > { %v1562_v56 = vmul.f32 %v1554_v50, %v1538_v16  ;;  %v1553_v57 = vadd.f32 0.0009, %v1545_v51 }
 0x2c9   : > { %v2075_v59 = vpop.f32.mrf.mxu1  ;;  %v1627_v60 = vadd.f32 %v1626_v55, %v1625_v53 }
 0x2ca   : > { %v1561_v17 = vmul.f32 %v1553_v57, %v1537_v54  ;;  %v1524_v62 = vsub.f32 %v2075_v59, %v1500_v48  ;;  %v1618_v2 = vmul.f32 %v2157_v58, %v1562_v56 }
 0x2cb   : > { %v1468_v1 = vpop.f32.mrf.mxu1 }
 0x2cc   : > { %v1617_v3 = vmul.f32 %v2159_v61, %v1561_v17  ;;  %v1548_v19 = vmul.f32 2.0, %v1524_v62  ;;  %v1523_v20 = vsub.f32 %v1468_v1, %v1499_v52  ;;  %v1630_v25 = vsel %vm1091_vm1, %v1618_v2, 0.0 }
 0x2ce   : > { %v1556_v18 = vadd.f32 0.0009, %v1548_v19  ;;  %v1547_v21 = vmul.f32 2.0, %v1523_v20  ;;  %v1628_v4 = vsel %vm1091_vm1, %v1617_v3, 0.0 }
 0x2cf   : > { %v1629_v11 = vadd.f32 %v1628_v4, %v1627_v60 }
 0x2d0   : > { %v1564_v14 = vmul.f32 %v1556_v18, %v1540_v10  ;;  %v1555_v22 = vadd.f32 0.0009, %v1547_v21 }
 0x2d1   : > { %v1631_v26 = vadd.f32 %v1630_v25, %v1629_v11 }
 0x2d2   : > { %v1563_v28 = vmul.f32 %v1555_v22, %v1539_v7  ;;  %v1620_v31 = vmul.f32 %v2161_v27, %v1564_v14 }
 0x2d4   : > { %v1619_v30 = vmul.f32 %v2163_v29, %v1563_v28  ;;  %v1634_v34 = vsel %vm1091_vm1, %v1620_v31, 0.0 }
 0x2d6   : > { %v1632_v32 = vsel %vm1091_vm1, %v1619_v30, 0.0 }
 0x2d7   : > { %v1633_v33 = vadd.f32 %v1632_v32, %v1631_v26 }
 0x2d9   : > { %v1635_v35 = vadd.f32 %v1634_v34, %v1633_v33 }
 0x2db   : > { %1636 = vadd.xlane.f32.xlu0 %v1635_v35 }
 0x364   : > { %v1637_v36 = vpop.xlane.xlu0 %1636 }
 0x365   : > { %v1638_v23 = vrot.slane %v1637_v36, 4 }
 0x367   : > { %v1639_v37 = vadd.f32 %v1638_v23, %v1637_v36 }
 0x369   : > { %v1640_v38 = vrot.slane %v1639_v37, 2 }
 0x36b   : > { %v1641_v39 = vadd.f32 %v1640_v38, %v1639_v37 }
 0x36d   : > { %v1642_v40 = vrot.slane %v1641_v39, 1 }
 0x36f   : > { %v1643_v5 = vadd.f32 %v1642_v40, %v1641_v39 }
 0x371   : > { %2076 = vpush %v1643_v5 }
 0x3a2   : > { %s2077_s28 = spop %2076 }
 0x3a3   : > { %v1645_v12 = vstv %s2077_s28 }
 0x3a4   : > { %1647 = vst.msk [vmem:[%s277_s13] sm:$0x1] %vm1646_vm2, %v1645_v12 }
 0x3a5 PF: > { %p13_p0 = scmp.ge.s32.totalorder %s2372_s20, 4   ;;  %s2878_s15 = smov %s2306_s16 }
 0x3a6   : > { %s2879_s16 = smov %s2310_s17  ;;  %s2880_s17 = smov %s2382_s23 }
 0x3a7   : > { %s2881_s18 = smov %s2372_s20  ;;  %15 = sbr.rel (!%p13_p0) target bundleno = 3 (0x3), region = 94 }
 0x3ac   :  { %1665 = vsyncpa [#allocation3], 1 }
 0x3ad   :  { %1667 = vsyncpa [#allocation3 + $0x1], 1 }
 0x3ae   :  { %1668 = vsyncpa [#allocation5], 1 }

</bundles_post_ra>
